<compile_context>
chip_gen: v7x
topology: tpu7x:2x2x1
jax: 0.10.0
libtpu: 0.0.40
codegen_flags: <defaults>
</compile_context>

<pallas_src>
import functools
from typing import NamedTuple

import jax
import jax.numpy as jnp
from jax.experimental import pallas as pl
from jax.experimental.pallas import tpu as pltpu


def _round_up(x: int, m: int) -> int:
    return ((x + m - 1) // m) * m


def _physical_vmem_bytes() -> int:
    """Physical VMEM of the attached TPU; conservative default if unknown."""
    try:
        info = pltpu.get_tpu_info()
        for name in ("vmem_capacity_bytes", "vmem_bytes", "vmem_size_bytes"):
            v = getattr(info, name, None)
            if v:
                return int(v)
    except Exception:
        pass
    return 64 * 1024 * 1024   # v7x physical size — safe lower bound


class Plan(NamedTuple):
    B: int
    D: int
    Dz: int
    Bp: int       # batch padded to sublane granularity (8)
    Dp: int       # feature dim padded to a multiple of tk
    Dzp: int      # latent dim padded to lane width (128)
    tk: int       # D-tile
    nD: int       # number of D-tiles
    x_resident: bool
    vmem_limit: int


def plan_tiling(B: int, D: int, Dz: int) -> Plan:
    """Choose tile sizes from the generation's VMEM (v5e/v6e 128 MiB, v7x 64 MiB)."""
    Bp = _round_up(B, 8)
    Dzp = _round_up(Dz, 128)

    phys = _physical_vmem_bytes()
    vmem_limit = (phys * 3) // 4                      # leave headroom for the compiler

    Dp0 = _round_up(D, 512)
    # persistent scratch: z/z' f32 accumulators, bf16 z copy, (Bp,128) L1 acc
    persistent = 2 * Bp * Dzp * 4 + Bp * Dzp * 2 + Bp * 128 * 4
    margin = 4 * 1024 * 1024
    usable = max(vmem_limit - margin - persistent, 1 << 20)

    # keep x resident in VMEM if (conservatively double-buffered) it is small
    x_res_bytes = 2 * Bp * Dp0 * 4
    x_resident = x_res_bytes <= usable // 3
    budget = usable - (x_res_bytes if x_resident else 0)

    # per-step working set ≈ 2 * (3 weight tiles bf16) + 2 * (x tile f32 / pad growth)
    per_tk = 2 * (3 * Dzp * 2) + 2 * Bp * 4           # ≈ 1.6 KB per tk unit at Dzp=128
    tk = (budget // per_tk) // 512 * 512
    tk = max(512, min(tk, 32768, Dp0))

    Dp = _round_up(D, tk)
    nD = Dp // tk
    return Plan(B, D, Dz, Bp, Dp, Dzp, tk, nD, x_resident, vmem_limit)


def prepare_weights(w_enc, w_dec, w_enc2, plan: Plan):
    """One-time pad + bf16 cast (hoisted out of the per-call path)."""
    D, Dz, Dp, Dzp = plan.D, plan.Dz, plan.Dp, plan.Dzp
    we = jnp.pad(w_enc.astype(jnp.bfloat16), ((0, Dp - D), (0, Dzp - Dz)))
    wd = jnp.pad(w_dec.astype(jnp.bfloat16), ((0, Dzp - Dz), (0, Dp - D)))
    we2 = jnp.pad(w_enc2.astype(jnp.bfloat16), ((0, Dp - D), (0, Dzp - Dz)))
    return jax.block_until_ready((we, wd, we2))


def _multiloss_kernel(sc_ref, x_ref, we_ref, wd_ref, we2_ref,
                      loss_ref,
                      z_acc, zp_acc, z_bf, l1_acc,
                      *, tk, inv_con, inv_enc, x_resident):
    """Two-phase fused kernel, grid = (2, nD).

    phase p==0 : z_acc += x_tile(bf16) @ w_enc_tile(bf16)          (MXU, f32 acc)
    phase p==1 : x'_tile = z_bf16 @ w_dec_tile(bf16)
                 l1_acc  += per-lane partial sums of |x_tile - x'_tile|
                 zp_acc  += x'_tile(bf16) @ w_enc2_tile(bf16)
    last step  : losses + Kendall weighting (factors precomputed in SMEM).
    """
    p = pl.program_id(0)          # 0 = encode, 1 = decode / losses
    k = pl.program_id(1)          # feature (D) tile index
    nk = pl.num_programs(1)

    if x_resident:
        start = pl.multiple_of(k * tk, 512)
        xk = x_ref[:, pl.ds(start, tk)]          # x lives fully in VMEM
    else:
        xk = x_ref[...]                          # per-tile DMA'd x

    @pl.when(jnp.logical_and(p == 0, k == 0))
    def _init():
        z_acc[...] = jnp.zeros_like(z_acc)
        zp_acc[...] = jnp.zeros_like(zp_acc)
        l1_acc[...] = jnp.zeros_like(l1_acc)

    @pl.when(p == 0)
    def _encode():
        z_acc[...] += jnp.dot(xk.astype(jnp.bfloat16), we_ref[...],
                              preferred_element_type=jnp.float32)

    @pl.when(jnp.logical_and(p == 1, k == 0))
    def _cast_z():
        # hoisted z -> bf16 cast, reused by every phase-1 tile
        z_bf[...] = z_acc[...].astype(jnp.bfloat16)

    @pl.when(p == 1)
    def _decode():
        xp = jnp.dot(z_bf[...], wd_ref[...], preferred_element_type=jnp.float32)
        diff = jnp.abs(xk - xp)                  # (Bp, tk), padding rows/cols are 0
        # per-lane partial sums (pure VPU adds); scalar reduce deferred to finalize
        part = l1_acc[...]
        for g in range(tk // 128):
            part = part + diff[:, g * 128:(g + 1) * 128]
        l1_acc[...] = part
        zp_acc[...] += jnp.dot(xp.astype(jnp.bfloat16), we2_ref[...],
                               preferred_element_type=jnp.float32)

    @pl.when(jnp.logical_and(p == 1, k == nk - 1))
    def _finalize():
        lv0 = sc_ref[0]
        lv1 = sc_ref[1]
        f_con = sc_ref[2]                         # exp(-lv0), computed in wrapper
        f_enc = sc_ref[3]                         # exp(-lv1)
        l_con = jnp.sum(l1_acc[...]) * inv_con    # mean |x - x'| over real elems
        d = z_acc[...] - zp_acc[...]
        l_enc = jnp.sum(d * d) * inv_enc          # MSE(z, z') over real elems
        # Kendall uncertainty weighting: exp(-s) * L + s, summed over tasks
        loss_ref[0] = f_con * l_con + lv0 + f_enc * l_enc + lv1


@functools.partial(jax.jit, static_argnames=("plan",))
def multi_loss_forward(x_nchw, log_vars, we_p, wd_p, we2_p, *, plan: Plan):
    """Mirrors multiLoss.forward: returns (loss_mtl, log_vars, factors).

    Weights must be pre-padded / pre-cast via prepare_weights (done once).
    log_vars / factors are returned as live device arrays (no host sync).
    """
    B, D, Dz = plan.B, plan.D, plan.Dz

    x_flat = x_nchw.reshape(x_nchw.shape[0], -1).astype(jnp.float32)
    x_pad = jnp.pad(x_flat, ((0, plan.Bp - B), (0, plan.Dp - D)))

    log_vars_f32 = log_vars.astype(jnp.float32)
    factors = jnp.exp(-log_vars_f32)
    scalars = jnp.concatenate([log_vars_f32, factors])   # -> SMEM scalar prefetch

    kernel = functools.partial(
        _multiloss_kernel,
        tk=plan.tk,
        inv_con=1.0 / float(B * D),     # divide by *real* element counts only
        inv_enc=1.0 / float(B * Dz),
        x_resident=plan.x_resident,
    )

    if plan.x_resident:
        # x DMA'd once, kept resident across both phases; sliced in-kernel
        x_spec = pl.BlockSpec((plan.Bp, plan.Dp), lambda p, k, sc: (0, 0))
    else:
        x_spec = pl.BlockSpec((plan.Bp, plan.tk), lambda p, k, sc: (0, k))

    loss = pl.pallas_call(
        kernel,
        out_shape=jax.ShapeDtypeStruct((1,), jnp.float32),
        grid_spec=pltpu.PrefetchScalarGridSpec(
            num_scalar_prefetch=1,            # [lv0, lv1, f_con, f_enc] -> SMEM
            grid=(2, plan.nD),
            in_specs=[
                x_spec,
                # w_enc: tiled in phase 0, frozen at block 0 in phase 1 (DMA dedup)
                pl.BlockSpec((plan.tk, plan.Dzp), lambda p, k, sc: (k * (1 - p), 0)),
                # w_dec: frozen in phase 0, tiled in phase 1
                pl.BlockSpec((plan.Dzp, plan.tk), lambda p, k, sc: (0, k * p)),
                # w_enc2: frozen in phase 0, tiled in phase 1
                pl.BlockSpec((plan.tk, plan.Dzp), lambda p, k, sc: (k * p, 0)),
            ],
            out_specs=pl.BlockSpec((1,), lambda p, k, sc: (0,),
                                   memory_space=pltpu.MemorySpace.SMEM),
            scratch_shapes=[
                pltpu.VMEM((plan.Bp, plan.Dzp), jnp.float32),    # z accumulator
                pltpu.VMEM((plan.Bp, plan.Dzp), jnp.float32),    # z' accumulator
                pltpu.VMEM((plan.Bp, plan.Dzp), jnp.bfloat16),   # hoisted bf16 z
                pltpu.VMEM((plan.Bp, 128), jnp.float32),         # L1 lane accumulator
            ],
        ),
        compiler_params=pltpu.CompilerParams(
            # both axes carry accumulator state (sequential reductions)
            dimension_semantics=("arbitrary", "arbitrary"),
            vmem_limit_bytes=plan.vmem_limit,
        ),
    )(scalars, x_pad, we_p, wd_p, we2_p)

    return loss[0], log_vars, (factors[0], factors[1])


if __name__ == "__main__":
    key = jax.random.PRNGKey(0)
    k_x, k_e, k_d, k_e2 = jax.random.split(key, 4)

    # small shapes consistent with an NCHW image autoencoder
    B, C, H, W = 2, 4, 16, 16
    D = C * H * W          # 1024
    Dz = 32                # latent size

    x = jax.random.normal(k_x, (B, C, H, W), dtype=jnp.float32)

    # deterministic synthetic model parameters
    w_enc = jax.random.normal(k_e, (D, Dz), dtype=jnp.float32) * 0.05
    w_dec = jax.random.normal(k_d, (Dz, D), dtype=jnp.float32) * 0.05
    w_enc2 = jax.random.normal(k_e2, (D, Dz), dtype=jnp.float32) * 0.05

    # initLog for the nn.Parameter log_vars
    init_log = jnp.array([0.25, -0.5], dtype=jnp.float32)

    # "model init": tiling plan + one-time padded bf16 weight copies
    plan = plan_tiling(B, D, Dz)
    we_p, wd_p, we2_p = prepare_weights(w_enc, w_dec, w_enc2, plan)

    loss_mtl, log_vars_out, factors = multi_loss_forward(
        x, init_log, we_p, wd_p, we2_p, plan=plan)

    loss_mtl = jax.block_until_ready(loss_mtl)
    jax.block_until_ready(log_vars_out)
    jax.block_until_ready(factors[0])
    jax.block_until_ready(factors[1])

    # f32 reference (kernel runs the weight path in bf16 -> loose tolerance)
    xf = x.reshape(B, -1)
    z_ref = xf @ w_enc
    xp_ref = z_ref @ w_dec
    zp_ref = xp_ref @ w_enc2
    f_ref = jnp.exp(-init_log)
    ref = (f_ref[0] * jnp.mean(jnp.abs(xf - xp_ref)) + init_log[0]
           + f_ref[1] * jnp.mean((z_ref - zp_ref) ** 2) + init_log[1])
    rel = abs(float(loss_mtl) - float(ref)) / max(abs(float(ref)), 1e-6)
    if rel > 0.05:
        raise SystemExit(
            f"MISMATCH: kernel={float(loss_mtl):.6f} ref={float(ref):.6f} rel={rel:.4f}")

    print("KERNEL_OK")
</pallas_src>

<mosaic_0001>
module attributes {stable_mosaic.version = 11 : i64} {
  func.func @_multiloss_kernel(%arg0: i32, %arg1: i32, %arg2: memref<4xf32, #tpu.memory_space<smem>>, %arg3: memref<8x1024xf32, #tpu.memory_space<vmem>>, %arg4: memref<1024x128xbf16, #tpu.memory_space<vmem>>, %arg5: memref<128x1024xbf16, #tpu.memory_space<vmem>>, %arg6: memref<1024x128xbf16, #tpu.memory_space<vmem>>, %arg7: memref<1xf32, #tpu.memory_space<smem>>, %arg8: memref<8x128xf32, #tpu.memory_space<vmem>>, %arg9: memref<8x128xf32, #tpu.memory_space<vmem>>, %arg10: memref<8x128xbf16, #tpu.memory_space<vmem>>, %arg11: memref<8x128xf32, #tpu.memory_space<vmem>>) attributes {dimension_semantics = [#tpu.dimension_semantics<arbitrary>, #tpu.dimension_semantics<arbitrary>], iteration_bounds = array<i64: 2, 1>, scalar_prefetch = 1 : i64, scratch_operands = 4 : i64, tpu.core_type = #tpu.core_type<tc>, window_params = [{pipeline_mode = #tpu.pipeline_mode<synchronous>, transform_indices = @transform_0, window_bounds = array<i64: 8, 1024>}, {transform_indices = @transform_1, window_bounds = array<i64: 1024, 128>}, {transform_indices = @transform_2, window_bounds = array<i64: 128, 1024>}, {transform_indices = @transform_3, window_bounds = array<i64: 1024, 128>}, {transform_indices = @transform_4, window_bounds = array<i64: 1>}]} {
    %c1024_i32 = arith.constant 1024 : i32
    %0 = arith.muli %arg1, %c1024_i32 : i32
    %1 = tpu.assume_multiple %0, 512 : i32
    %c0 = arith.constant 0 : index
    %2 = arith.index_cast %1 : i32 to index
    %3 = vector.load %arg3[%c0, %2] : memref<8x1024xf32, #tpu.memory_space<vmem>>, vector<8x1024xf32>
    %c0_i32 = arith.constant 0 : i32
    %4 = arith.cmpi eq, %arg0, %c0_i32 : i32
    %c0_i32_0 = arith.constant 0 : i32
    %5 = arith.cmpi eq, %arg1, %c0_i32_0 : i32
    %6 = arith.andi %4, %5 : i1
    %7 = arith.extui %6 : i1 to i32
    %c0_i32_1 = arith.constant 0 : i32
    %8 = arith.cmpi ne, %7, %c0_i32_1 : i32
    scf.if %8 {
      %cst = arith.constant 0.000000e+00 : f32
      %25 = vector.broadcast %cst : f32 to vector<8x128xf32>
      %c0_11 = arith.constant 0 : index
      %c0_12 = arith.constant 0 : index
      %26 = vector.load %arg8[%c0_11, %c0_12] : memref<8x128xf32, #tpu.memory_space<vmem>>, vector<8x128xf32>
      tpu.vector_store %arg8[%c0_11, %c0_12], %25 {strides = array<i32>} : memref<8x128xf32, #tpu.memory_space<vmem>>, vector<8x128xf32>,
      %cst_13 = arith.constant 0.000000e+00 : f32
      %27 = vector.broadcast %cst_13 : f32 to vector<8x128xf32>
      %c0_14 = arith.constant 0 : index
      %c0_15 = arith.constant 0 : index
      %28 = vector.load %arg9[%c0_14, %c0_15] : memref<8x128xf32, #tpu.memory_space<vmem>>, vector<8x128xf32>
      tpu.vector_store %arg9[%c0_14, %c0_15], %27 {strides = array<i32>} : memref<8x128xf32, #tpu.memory_space<vmem>>, vector<8x128xf32>,
      %cst_16 = arith.constant 0.000000e+00 : f32
      %29 = vector.broadcast %cst_16 : f32 to vector<8x128xf32>
      %c0_17 = arith.constant 0 : index
      %c0_18 = arith.constant 0 : index
      %30 = vector.load %arg11[%c0_17, %c0_18] : memref<8x128xf32, #tpu.memory_space<vmem>>, vector<8x128xf32>
      tpu.vector_store %arg11[%c0_17, %c0_18], %29 {strides = array<i32>} : memref<8x128xf32, #tpu.memory_space<vmem>>, vector<8x128xf32>,
    } else {
    }
    %c0_i32_2 = arith.constant 0 : i32
    %9 = arith.cmpi eq, %arg0, %c0_i32_2 : i32
    %10 = arith.extui %9 : i1 to i32
    %c0_i32_3 = arith.constant 0 : i32
    %11 = arith.cmpi ne, %10, %c0_i32_3 : i32
    scf.if %11 {
      %c0_11 = arith.constant 0 : index
      %c0_12 = arith.constant 0 : index
      %25 = vector.load %arg8[%c0_11, %c0_12] : memref<8x128xf32, #tpu.memory_space<vmem>>, vector<8x128xf32>
      %26 = arith.truncf %3 : vector<8x1024xf32> to vector<8x1024xbf16>
      %c0_13 = arith.constant 0 : index
      %c0_14 = arith.constant 0 : index
      %27 = vector.load %arg4[%c0_13, %c0_14] : memref<1024x128xbf16, #tpu.memory_space<vmem>>, vector<1024x128xbf16>
      %cst = arith.constant dense<0.000000e+00> : vector<8x128xf32>
      %28 = tpu.matmul %26, %27, %cst {dimension_numbers = #tpu.dot_dimension_numbers<[1], [0], [0], [1], [0, 0, 1, 1], [], []>} : vector<8x1024xbf16>, vector<1024x128xbf16>, vector<8x128xf32> -> vector<8x128xf32>
      %29 = arith.addf %25, %28 : vector<8x128xf32>
      %c0_15 = arith.constant 0 : index
      %c0_16 = arith.constant 0 : index
      %30 = vector.load %arg8[%c0_15, %c0_16] : memref<8x128xf32, #tpu.memory_space<vmem>>, vector<8x128xf32>
      tpu.vector_store %arg8[%c0_15, %c0_16], %29 {strides = array<i32>} : memref<8x128xf32, #tpu.memory_space<vmem>>, vector<8x128xf32>,
    } else {
    }
    %c1_i32 = arith.constant 1 : i32
    %12 = arith.cmpi eq, %arg0, %c1_i32 : i32
    %c0_i32_4 = arith.constant 0 : i32
    %13 = arith.cmpi eq, %arg1, %c0_i32_4 : i32
    %14 = arith.andi %12, %13 : i1
    %15 = arith.extui %14 : i1 to i32
    %c0_i32_5 = arith.constant 0 : i32
    %16 = arith.cmpi ne, %15, %c0_i32_5 : i32
    scf.if %16 {
      %c0_11 = arith.constant 0 : index
      %c0_12 = arith.constant 0 : index
      %25 = vector.load %arg8[%c0_11, %c0_12] : memref<8x128xf32, #tpu.memory_space<vmem>>, vector<8x128xf32>
      %26 = arith.truncf %25 : vector<8x128xf32> to vector<8x128xbf16>
      %c0_13 = arith.constant 0 : index
      %c0_14 = arith.constant 0 : index
      %27 = vector.load %arg10[%c0_13, %c0_14] : memref<8x128xbf16, #tpu.memory_space<vmem>>, vector<8x128xbf16>
      tpu.vector_store %arg10[%c0_13, %c0_14], %26 {strides = array<i32>} : memref<8x128xbf16, #tpu.memory_space<vmem>>, vector<8x128xbf16>,
    } else {
    }
    %c1_i32_6 = arith.constant 1 : i32
    %17 = arith.cmpi eq, %arg0, %c1_i32_6 : i32
    %18 = arith.extui %17 : i1 to i32
    %c0_i32_7 = arith.constant 0 : i32
    %19 = arith.cmpi ne, %18, %c0_i32_7 : i32
    scf.if %19 {
      %c0_11 = arith.constant 0 : index
      %c0_12 = arith.constant 0 : index
      %25 = vector.load %arg10[%c0_11, %c0_12] : memref<8x128xbf16, #tpu.memory_space<vmem>>, vector<8x128xbf16>
      %c0_13 = arith.constant 0 : index
      %c0_14 = arith.constant 0 : index
      %26 = vector.load %arg5[%c0_13, %c0_14] : memref<128x1024xbf16, #tpu.memory_space<vmem>>, vector<128x1024xbf16>
      %cst = arith.constant dense<0.000000e+00> : vector<8x1024xf32>
      %27 = tpu.matmul %25, %26, %cst {dimension_numbers = #tpu.dot_dimension_numbers<[1], [0], [0], [1], [0, 0, 1, 1], [], []>} : vector<8x128xbf16>, vector<128x1024xbf16>, vector<8x1024xf32> -> vector<8x1024xf32>
      %28 = arith.subf %3, %27 : vector<8x1024xf32>
      %29 = math.absf %28 : vector<8x1024xf32>
      %c0_15 = arith.constant 0 : index
      %c0_16 = arith.constant 0 : index
      %30 = vector.load %arg11[%c0_15, %c0_16] : memref<8x128xf32, #tpu.memory_space<vmem>>, vector<8x128xf32>
      %31 = vector.extract_strided_slice %29 {offsets = [0, 0], sizes = [8, 128], strides = [1, 1]} : vector<8x1024xf32> to vector<8x128xf32>
      %32 = arith.addf %30, %31 : vector<8x128xf32>
      %33 = vector.extract_strided_slice %29 {offsets = [0, 128], sizes = [8, 128], strides = [1, 1]} : vector<8x1024xf32> to vector<8x128xf32>
      %34 = arith.addf %32, %33 : vector<8x128xf32>
      %35 = vector.extract_strided_slice %29 {offsets = [0, 256], sizes = [8, 128], strides = [1, 1]} : vector<8x1024xf32> to vector<8x128xf32>
      %36 = arith.addf %34, %35 : vector<8x128xf32>
      %37 = vector.extract_strided_slice %29 {offsets = [0, 384], sizes = [8, 128], strides = [1, 1]} : vector<8x1024xf32> to vector<8x128xf32>
      %38 = arith.addf %36, %37 : vector<8x128xf32>
      %39 = vector.extract_strided_slice %29 {offsets = [0, 512], sizes = [8, 128], strides = [1, 1]} : vector<8x1024xf32> to vector<8x128xf32>
      %40 = arith.addf %38, %39 : vector<8x128xf32>
      %41 = vector.extract_strided_slice %29 {offsets = [0, 640], sizes = [8, 128], strides = [1, 1]} : vector<8x1024xf32> to vector<8x128xf32>
      %42 = arith.addf %40, %41 : vector<8x128xf32>
      %43 = vector.extract_strided_slice %29 {offsets = [0, 768], sizes = [8, 128], strides = [1, 1]} : vector<8x1024xf32> to vector<8x128xf32>
      %44 = arith.addf %42, %43 : vector<8x128xf32>
      %45 = vector.extract_strided_slice %29 {offsets = [0, 896], sizes = [8, 128], strides = [1, 1]} : vector<8x1024xf32> to vector<8x128xf32>
      %46 = arith.addf %44, %45 : vector<8x128xf32>
      %c0_17 = arith.constant 0 : index
      %c0_18 = arith.constant 0 : index
      %47 = vector.load %arg11[%c0_17, %c0_18] : memref<8x128xf32, #tpu.memory_space<vmem>>, vector<8x128xf32>
      tpu.vector_store %arg11[%c0_17, %c0_18], %46 {strides = array<i32>} : memref<8x128xf32, #tpu.memory_space<vmem>>, vector<8x128xf32>,
      %c0_19 = arith.constant 0 : index
      %c0_20 = arith.constant 0 : index
      %48 = vector.load %arg9[%c0_19, %c0_20] : memref<8x128xf32, #tpu.memory_space<vmem>>, vector<8x128xf32>
      %49 = arith.truncf %27 : vector<8x1024xf32> to vector<8x1024xbf16>
      %c0_21 = arith.constant 0 : index
      %c0_22 = arith.constant 0 : index
      %50 = vector.load %arg6[%c0_21, %c0_22] : memref<1024x128xbf16, #tpu.memory_space<vmem>>, vector<1024x128xbf16>
      %cst_23 = arith.constant dense<0.000000e+00> : vector<8x128xf32>
      %51 = tpu.matmul %49, %50, %cst_23 {dimension_numbers = #tpu.dot_dimension_numbers<[1], [0], [0], [1], [0, 0, 1, 1], [], []>} : vector<8x1024xbf16>, vector<1024x128xbf16>, vector<8x128xf32> -> vector<8x128xf32>
      %52 = arith.addf %48, %51 : vector<8x128xf32>
      %c0_24 = arith.constant 0 : index
      %c0_25 = arith.constant 0 : index
      %53 = vector.load %arg9[%c0_24, %c0_25] : memref<8x128xf32, #tpu.memory_space<vmem>>, vector<8x128xf32>
      tpu.vector_store %arg9[%c0_24, %c0_25], %52 {strides = array<i32>} : memref<8x128xf32, #tpu.memory_space<vmem>>, vector<8x128xf32>,
    } else {
    }
    %c1_i32_8 = arith.constant 1 : i32
    %20 = arith.cmpi eq, %arg0, %c1_i32_8 : i32
    %c0_i32_9 = arith.constant 0 : i32
    %21 = arith.cmpi eq, %arg1, %c0_i32_9 : i32
    %22 = arith.andi %20, %21 : i1
    %23 = arith.extui %22 : i1 to i32
    %c0_i32_10 = arith.constant 0 : i32
    %24 = arith.cmpi ne, %23, %c0_i32_10 : i32
    scf.if %24 {
      %c0_11 = arith.constant 0 : index
      %25 = memref.load %arg2[%c0_11] : memref<4xf32, #tpu.memory_space<smem>>
      %c1 = arith.constant 1 : index
      %26 = memref.load %arg2[%c1] : memref<4xf32, #tpu.memory_space<smem>>
      %c2 = arith.constant 2 : index
      %27 = memref.load %arg2[%c2] : memref<4xf32, #tpu.memory_space<smem>>
      %c3 = arith.constant 3 : index
      %28 = memref.load %arg2[%c3] : memref<4xf32, #tpu.memory_space<smem>>
      %c0_12 = arith.constant 0 : index
      %c0_13 = arith.constant 0 : index
      %29 = vector.load %arg11[%c0_12, %c0_13] : memref<8x128xf32, #tpu.memory_space<vmem>>, vector<8x128xf32>
      %30 = vector.shape_cast %29 : vector<8x128xf32> to vector<1x8x128xf32>
      %cst = arith.constant dense<0.000000e+00> : vector<1xf32>
      %31 = vector.multi_reduction <add>, %30, %cst [1, 2] : vector<1x8x128xf32> to vector<1xf32>
      %32 = vector.shape_cast %31 : vector<1xf32> to vector<1x1x1xf32>
      %33 = vector.extract %32[0, 0, 0] : f32 from vector<1x1x1xf32>
      %cst_14 = arith.constant 4.8828125E-4 : f32
      %34 = arith.mulf %33, %cst_14 : f32
      %c0_15 = arith.constant 0 : index
      %c0_16 = arith.constant 0 : index
      %35 = vector.load %arg8[%c0_15, %c0_16] : memref<8x128xf32, #tpu.memory_space<vmem>>, vector<8x128xf32>
      %c0_17 = arith.constant 0 : index
      %c0_18 = arith.constant 0 : index
      %36 = vector.load %arg9[%c0_17, %c0_18] : memref<8x128xf32, #tpu.memory_space<vmem>>, vector<8x128xf32>
      %37 = arith.subf %35, %36 : vector<8x128xf32>
      %38 = arith.mulf %37, %37 : vector<8x128xf32>
      %39 = vector.shape_cast %38 : vector<8x128xf32> to vector<1x8x128xf32>
      %cst_19 = arith.constant dense<0.000000e+00> : vector<1xf32>
      %40 = vector.multi_reduction <add>, %39, %cst_19 [1, 2] : vector<1x8x128xf32> to vector<1xf32>
      %41 = vector.shape_cast %40 : vector<1xf32> to vector<1x1x1xf32>
      %42 = vector.extract %41[0, 0, 0] : f32 from vector<1x1x1xf32>
      %cst_20 = arith.constant 1.562500e-02 : f32
      %43 = arith.mulf %42, %cst_20 : f32
      %44 = arith.mulf %27, %34 : f32
      %45 = arith.addf %44, %25 : f32
      %46 = arith.mulf %28, %43 : f32
      %47 = arith.addf %45, %46 : f32
      %48 = arith.addf %47, %26 : f32
      %c0_21 = arith.constant 0 : index
      %49 = memref.load %arg7[%c0_21] : memref<1xf32, #tpu.memory_space<smem>>
      memref.store %48, %arg7[%c0_21] : memref<1xf32, #tpu.memory_space<smem>>
    } else {
    }
    return
  }
  func.func @transform_0(%arg0: i32, %arg1: i32, %arg2: memref<4xf32, #tpu.memory_space<smem>>) -> (i32, i32) {
    %c0_i32 = arith.constant 0 : i32
    %c0_i32_0 = arith.constant 0 : i32
    %c0_i32_1 = arith.constant 0 : i32
    return %c0_i32, %c0_i32_0 : i32, i32
  }
  func.func @transform_1(%arg0: i32, %arg1: i32, %arg2: memref<4xf32, #tpu.memory_space<smem>>) -> (i32, i32) {
    %c1_i32 = arith.constant 1 : i32
    %0 = arith.subi %c1_i32, %arg0 : i32
    %1 = arith.muli %arg1, %0 : i32
    %c0_i32 = arith.constant 0 : i32
    %c0_i32_0 = arith.constant 0 : i32
    return %1, %c0_i32 : i32, i32
  }
  func.func @transform_2(%arg0: i32, %arg1: i32, %arg2: memref<4xf32, #tpu.memory_space<smem>>) -> (i32, i32) {
    %0 = arith.muli %arg1, %arg0 : i32
    %c0_i32 = arith.constant 0 : i32
    %c0_i32_0 = arith.constant 0 : i32
    return %c0_i32, %0 : i32, i32
  }
  func.func @transform_3(%arg0: i32, %arg1: i32, %arg2: memref<4xf32, #tpu.memory_space<smem>>) -> (i32, i32) {
    %0 = arith.muli %arg1, %arg0 : i32
    %c0_i32 = arith.constant 0 : i32
    %c0_i32_0 = arith.constant 0 : i32
    return %0, %c0_i32 : i32, i32
  }
  func.func @transform_4(%arg0: i32, %arg1: i32, %arg2: memref<4xf32, #tpu.memory_space<smem>>) -> i32 {
    %c0_i32 = arith.constant 0 : i32
    %c0_i32_0 = arith.constant 0 : i32
    return %c0_i32 : i32
  }
}

</mosaic_0001>

<bundles_post_ra>
// kernel: multi_loss_forward.1
= control target key start
LH: loop header
LB: loop body
LE: loop exit
PB: predicated region body
PF: predicated region fallthrough
CT: control target
= control target key end

     0   :  { %s3449_s0 = inlined_call_operand.vmem [shape: f32[4], index: 0, kind: input, shape index: {}]   ;;  %s3450_s1 = inlined_call_operand.vmem [shape: f32[8,1024], index: 1, kind: input, shape index: {}]   ;;  %s3451_s2 = inlined_call_operand.hbm [shape: bf16[1024,128], index: 2, kind: input, shape index: {}]   ;;  %s3452_s3 = inlined_call_operand.hbm [shape: bf16[128,1024], index: 3, kind: input, shape index: {}]   ;;  %s3453_s4 = inlined_call_operand.hbm [shape: bf16[1024,128], index: 4, kind: input, shape index: {}]   ;;  %s3454_s5 = inlined_call_operand.hbm [shape: f32[1], index: 5, kind: output, shape index: {}]  }
   0x1   :  { %s10_s20 = sshll.u32 %s3449_s0, 4  ;;  %s11_s20 = int_to_ptr.vmem [resolvable:$true] %s10_s20 }
   0x2   :  { %s3038_s21 = scalar_lea.vmem %s11_s20, 16  ;;  %p3043_p1 = scmp.lt.s32.totalorder %s11_s20, %s11_s20 }
   0x3   :  { %p3039_p0 = scmp.ne.s32.totalorder %s11_s20, %s3038_s21  ;;  %p3044_p2 = scmp.lt.s32.totalorder %s3038_s21, %s3038_s21 }
   0x5   :  { %p3045_p3 = por %p3044_p2, %p3043_p1 }
   0x7   :  { %p3046_p4 = pnand %p3045_p3, %p3039_p0 }
   0x9   :  { %3049 = shalt.err (!%p3046_p4)  }
   0xa   :  { %s3184_s22 = smov [#allocation7]  }
   0xb   :  { %13 = dma.vmem_to_smem %s11_s20, 16, %s3184_s22, [#allocation6] }
   0xc   :  { %3158 = dma.done.wait [#allocation6], 16 }
   0xd   :  { %3159 = vsyncadd [#allocation6], 4294967280 }
   0xe   :  { %15 = sfence }
   0xf   :  { %16 = vsyncpa [#allocation9], 0 }
  0x10   :  { %18 = vsyncpa [#allocation9 + $0x1], 0 }
  0x11   :  { %19 = vsyncpa [#allocation12], 0 }
  0x12   :  { %21 = vsyncpa [#allocation12 + $0x1], 0 }
  0x13   :  { %22 = vsyncpa [#allocation10], 0  ;;  %s3228_s23 = smov 0   ;;  %s3230_s0 = smov 0  }
  0x14   :  { %s3232_s24 = smov 0  }
  0x15 LB: > { %s3185_s25 = smov [#allocation11]   ;;  %s3244_s27 = sadd.s32 4294967295, %s3182_s24   ;;  %s3182_s24 = sphi %s3232_s24, %s28_s24   ;;  %s3178_s0 = sphi %s3230_s0, %s3460_s0   ;;  %s3174_s23 = sphi %s3228_s23, %s3459_s23  }
  0x16   : > { %s224_s26 = sshll.u32 %s3185_s25, 4  ;;  %p2866_p5 = scmp.lt.s32.totalorder %s3182_s24, 2  ;;  %s3249_s26 = int_to_ptr.vmem [resolvable:$true] %s224_s26 }
  0x17   : > { %p2867_p6 = scmp.eq.s32.totalorder %s3182_s24, 0  ;;  %s212_s28 = sand.u32 1, %s3182_s24  }
  0x18   : > { %p2451_p8 = scmp.ge.s32.totalorder %s3182_s24, 1  ;;  %p254_p9 = scmp.lt.s32.totalorder %s3182_s24, 3 }
  0x19   : > { %p3251_p7 = pnand %p2867_p6, %p2866_p5  ;;  %s3257_s30 = scalar_lea.sflag [#allocation12], %s212_s28 }
  0x1a   : > { %s3050_s8 = scalar_lea.hbm %s3452_s3, 8192 }
  0x1b   : > { %p3051_p10 = scmp.ne.s32.totalorder %s3452_s3, %s3050_s8  ;;  %p3267_p11 = pneg %p3251_p7 }
  0x1c   : > { %p3057_p0 = scmp.lt.u32.totalorder %s3050_s8, %s3452_s3 }
  0x1d   : > { %p3053_p12 = pnand %p3267_p11, %p3051_p10 }
  0x1f   : > { %p3054_p13 = pneg %p3053_p12 }
  0x21   : > { %p3059_p1 = pnand %p3057_p0, %p3054_p13 }
  0x23   : > { %3062 = shalt.err (!%p3059_p1)
}
  0x24   : > { %s3063_s14 = scalar_lea.vmem %s3249_s26, 8192  ;;  %s3070_s15 = scalar_lea.vmem %s3249_s26, 16384 }
  0x25   : > { %p3064_p2 = scmp.ne.s32.totalorder %s3249_s26, %s3063_s14  ;;  %p3071_p5 = scmp.lt.s32.totalorder %s3249_s26, %s3249_s26 }
  0x26   : > { %p3072_p6 = scmp.lt.s32.totalorder %s3070_s15, %s3063_s14 }
  0x27   : > { %p3066_p3 = pnand %p3064_p2, %p3267_p11 }
  0x28   : > { %p3073_p10 = por %p3072_p6, %p3071_p5 }
  0x29   : > { %p3067_p4 = pneg %p3066_p3 }
  0x2b   : > { %p3074_p12 = pnand %p3073_p10, %p3067_p4 }
  0x2d   : > { %3077 = shalt.err (!%p3074_p12)
}
  0x2e   : > { %s3186_s16 = smov 512   ;;  %s3187_s17 = smov 32  }
  0x2f   : > { %2862 = dma.hbm_to_vmem [thread:$0]  (!%p3251_p7), %s3452_s3, 8192, %s3249_s26, %s3257_s30, %s3186_s16, %s3186_s16, %s3187_s17  }
  0x30   : > { %p3294_p13 = pnand %p2451_p8, %p254_p9  ;;  %s40_s21 = sadd.s32 1, %s3178_s0 }
  0x31   : > { %s3188_s22 = smov [#allocation8]   ;;  %p42_p0 = scmp.ge.s32.totalorder %s40_s21, 2 }
  0x32   : > { %s3457_s20 = scalar_select %p3294_p13, 1, 0 }
  0x33   : > { %s202_s25 = sshll.u32 %s3188_s22, 4  ;;  %s3462_s21 = smov (%p42_p0, %s40_s21), 0  ;;  %s203_s25 = int_to_ptr.vmem [resolvable:$true] %s202_s25 }
  0x34   : > { %s3078_s7 = scalar_lea.hbm %s3451_s2, 8192 }
  0x35   : > { %p3079_p1 = scmp.ne.s32.totalorder %s3451_s2, %s3078_s7  ;;  %p3085_p2 = scmp.lt.u32.totalorder %s3078_s7, %s3451_s2 }
  0x37   : > { %p3081_p8 = pnand %p3079_p1, %p3267_p11 }
  0x39   : > { %p3082_p9 = pneg %p3081_p8 }
  0x3b   : > { %p3087_p3 = pnand %p3085_p2, %p3082_p9 }
  0x3d   : > { %3090 = shalt.err (!%p3087_p3)
}
  0x3e   : > { %s3091_s12 = scalar_lea.vmem %s203_s25, 8192  ;;  %s3098_s13 = scalar_lea.vmem %s203_s25, 16384 }
  0x3f   : > { %p3092_p4 = scmp.ne.s32.totalorder %s203_s25, %s3091_s12  ;;  %p3099_p10 = scmp.lt.s32.totalorder %s203_s25, %s203_s25 }
  0x40   : > { %p3100_p12 = scmp.lt.s32.totalorder %s3098_s13, %s3091_s12 }
  0x41   : > { %p3094_p5 = pnand %p3092_p4, %p3267_p11 }
  0x42   : > { %p3101_p0 = por %p3100_p12, %p3099_p10 }
  0x43   : > { %p3095_p6 = pneg %p3094_p5 }
  0x45   : > { %p3102_p13 = pnand %p3101_p0, %p3095_p6 }
  0x47   : > { %3105 = shalt.err (!%p3102_p13)
}
  0x48   : > { %s3189_s14 = smov 64   ;;  %s3190_s15 = smov 4  }
  0x49   : > { %2859 = dma.hbm_to_vmem [thread:$0]  (!%p3251_p7), %s3451_s2, 8192, %s203_s25, [#allocation9], %s3189_s14, %s3189_s14, %s3190_s15  }
  0x4a   : > { %s3191_s18 = smov [#allocation13]   ;;  %s3106_s6 = scalar_lea.hbm %s3453_s4, 8192 }
  0x4b   : > { %s246_s19 = sshll.u32 %s3191_s18, 4  ;;  %p3107_p13 = scmp.ne.s32.totalorder %s3453_s4, %s3106_s6  ;;  %s247_s19 = int_to_ptr.vmem [resolvable:$true] %s246_s19 }
  0x4c   : > { %p3113_p9 = scmp.lt.u32.totalorder %s3106_s6, %s3453_s4 }
  0x4d   : > { %p3109_p1 = pnand %p3107_p13, %p3267_p11 }
  0x4f   : > { %p3110_p8 = pneg %p3109_p1 }
  0x51   : > { %p3115_p2 = pnand %p3113_p9, %p3110_p8 }
  0x53   : > { %3118 = shalt.err (!%p3115_p2)
}
  0x54   : > { %s3119_s25 = scalar_lea.vmem %s247_s19, 8192  ;;  %s3126_s10 = scalar_lea.vmem %s247_s19, 16384 }
  0x55   : > { %p3120_p3 = scmp.ne.s32.totalorder %s247_s19, %s3119_s25  ;;  %p3127_p6 = scmp.lt.s32.totalorder %s247_s19, %s247_s19 }
  0x56   : > { %p3128_p10 = scmp.lt.s32.totalorder %s3126_s10, %s3119_s25 }
  0x57   : > { %p3122_p4 = pnand %p3120_p3, %p3267_p11 }
  0x58   : > { %p3129_p12 = por %p3128_p10, %p3127_p6 }
  0x59   : > { %p3123_p5 = pneg %p3122_p4 }
  0x5b   : > { %p3130_p0 = pnand %p3129_p12, %p3123_p5 }
  0x5d   : > { %3133 = shalt.err (!%p3130_p0)
}
  0x5e   : > { %2865 = dma.hbm_to_vmem [thread:$0]  (!%p3251_p7), %s3453_s4, 8192, %s247_s19, %s3257_s30, %s3189_s14, %s3189_s14, %s3190_s15  }
  0x5f   : > { %p3458_p13 = scmp.ne.s32.totalorder %s3457_s20, 0 }
  0x60   : > { %p2870_p1 = scmp.eq.s32.totalorder (!%p3458_p13), %s3244_s27, 0 }
  0x61   : > { %258 = sbr.rel (%p3458_p13) target bundleno = 1162 (0x48a), region = 36 }
  0x68   : > { %3161 = dma.done.wait (%p2870_p1), [#allocation9], 8192  }
  0x69   : > { %3163 = vsyncadd (%p2870_p1), [#allocation9], 4294959104  ;;  %s269_s11 = sand.u32 1, %s3244_s27  }
  0x6a   : > { %s270_s16 = scalar_lea.sflag [#allocation12], %s269_s11 }
  0x6b   : > { %3165 = dma.done.wait (%p2870_p1), %s270_s16, 16384  }
  0x6c   : > { %3167 = vsyncadd (%p2870_p1), %s270_s16, 4294950912  ;;  %p333_p11 = scmp.eq.s32.totalorder %s3174_s23, 0  ;;  %v3346_v0 = vld [vmem:[%s3450_s1] sm:$0xff]  ;;  %v3351_v1 = vld [vmem:[%s3450_s1 + $0x8] sm:$0xff] }
  0x6d   : > { %v3356_v2 = vld [vmem:[%s3450_s1 + $0x10] sm:$0xff]  ;;  %v3361_v3 = vld [vmem:[%s3450_s1 + $0x18] sm:$0xff]  ;;  %v3366_v4 = vld [vmem:[%s3450_s1 + $0x20] sm:$0xff]  ;;  %v3192_v8 = vmov (%p333_p11), 0.0  }
  0x6e   : > { %v3371_v5 = vld [vmem:[%s3450_s1 + $0x28] sm:$0xff]  ;;  %v3376_v6 = vld [vmem:[%s3450_s1 + $0x30] sm:$0xff]  ;;  %v3381_v7 = vld [vmem:[%s3450_s1 + $0x38] sm:$0xff]  ;;  %338 = sbr.rel (!%p333_p11) target bundleno = 117 (0x75), region = 52  ;;  %339 = vst [vmem:[#allocation2] sm:$0xff] (%p333_p11), %v3192_v8 }
  0x6f   : > { %340 = vst [vmem:[#allocation3] sm:$0xff] (%p333_p11), %v3192_v8  ;;  %341 = vst [vmem:[#allocation5] sm:$0xff] (%p333_p11), %v3192_v8 }
  0x75 PF: > { %p2456_p7 = scmp.ne.s32.totalorder %s3174_s23, 0 }
  0x76   : > { %v2910_v9 = vld [vmem:[#allocation8 + $0x40] sm:$0xff] (!%p2456_p7)   ;;  %v347_v10 = vpack.c.bf16 (!%p2456_p7), %v3351_v1, %v3351_v1  ;;  %v349_v11 = vpack.c.bf16 (!%p2456_p7), %v3361_v3, %v3361_v3  ;;  %v2914_v15 = vld [vmem:[#allocation8 + $0x48] sm:$0xff] (!%p2456_p7)   ;;  %v2918_v19 = vld [vmem:[#allocation8 + $0x50] sm:$0xff] (!%p2456_p7)   ;;  %v346_v43 = vpack.c.bf16 (!%p2456_p7), %v3346_v0, %v3346_v0  ;;  %v348_v44 = vpack.c.bf16 (!%p2456_p7), %v3356_v2, %v3356_v2 }
  0x77   : > { %344 = sbr.rel (%p2456_p7) target bundleno = 406 (0x196), region = 56  ;;  %v2911_v12 = vld [vmem:[#allocation8 + $0xc0] sm:$0xff] (!%p2456_p7)   ;;  %2660 = vmatprep.subr.bf16.mxu0 (!%p2456_p7), %v2910_v9  ;;  %v2915_v16 = vld [vmem:[#allocation8 + $0xc8] sm:$0xff] (!%p2456_p7)   ;;  %v2919_v20 = vld [vmem:[#allocation8 + $0xd0] sm:$0xff] (!%p2456_p7)   ;;  %v351_v47 = vpack.c.bf16 (!%p2456_p7), %v3371_v5, %v3371_v5  ;;  %v353_v49 = vpack.c.bf16 (!%p2456_p7), %v3381_v7, %v3381_v7 }
  0x78   : > { %v2912_v13 = vld [vmem:[#allocation8] sm:$0xff] (!%p2456_p7)   ;;  %898 = vmatprep.mubr.bf16.mxu0 (!%p2456_p7), %v347_v10  ;;  %2682 = vmatprep.subr.bf16.mxu1 (!%p2456_p7), %v2911_v12  ;;  %v2916_v17 = vld [vmem:[#allocation8 + $0x8] sm:$0xff] (!%p2456_p7)   ;;  %v2920_v21 = vld [vmem:[#allocation8 + $0x10] sm:$0xff] (!%p2456_p7)  }
  0x79   : > { %v2913_v14 = vld [vmem:[#allocation8 + $0x80] sm:$0xff] (!%p2456_p7)   ;;  %938 = vmatprep.mubr.bf16.mxu1 (!%p2456_p7), %v349_v11  ;;  %2661 = vmatpush3.bf16.msra.mxu0 (!%p2456_p7), %v2912_v13  ;;  %v2917_v18 = vld [vmem:[#allocation8 + $0x88] sm:$0xff] (!%p2456_p7)   ;;  %v2921_v22 = vld [vmem:[#allocation8 + $0x90] sm:$0xff] (!%p2456_p7)  }
  0x7a   : > { %2683 = vmatpush3.bf16.msra.mxu1 (!%p2456_p7), %v2913_v14  ;;  %2662 = vmatprep.subr.bf16.mxu0 (!%p2456_p7), %v2914_v15  ;;  %v2922_v23 = vld [vmem:[#allocation8 + $0x58] sm:$0xff] (!%p2456_p7)   ;;  %v2926_v27 = vld [vmem:[#allocation8 + $0x60] sm:$0xff] (!%p2456_p7)   ;;  %v2930_v31 = vld [vmem:[#allocation8 + $0x68] sm:$0xff] (!%p2456_p7)  }
  0x7b   : > { %2684 = vmatprep.subr.bf16.mxu1 (!%p2456_p7), %v2915_v16  ;;  %v2923_v24 = vld [vmem:[#allocation8 + $0xd8] sm:$0xff] (!%p2456_p7)   ;;  %v2927_v28 = vld [vmem:[#allocation8 + $0xe0] sm:$0xff] (!%p2456_p7)   ;;  %v2931_v32 = vld [vmem:[#allocation8 + $0xe8] sm:$0xff] (!%p2456_p7)  }
  0x7c   : > { %v2924_v25 = vld [vmem:[#allocation8 + $0x18] sm:$0xff] (!%p2456_p7)   ;;  %v2928_v29 = vld [vmem:[#allocation8 + $0x20] sm:$0xff] (!%p2456_p7)   ;;  %v2932_v33 = vld [vmem:[#allocation8 + $0x28] sm:$0xff] (!%p2456_p7)  }
  0x7d   : > { %2663 = vmatpush3.bf16.msra.mxu0 (!%p2456_p7), %v2916_v17  ;;  %v2925_v26 = vld [vmem:[#allocation8 + $0x98] sm:$0xff] (!%p2456_p7)   ;;  %v2929_v30 = vld [vmem:[#allocation8 + $0xa0] sm:$0xff] (!%p2456_p7)   ;;  %v2933_v34 = vld [vmem:[#allocation8 + $0xa8] sm:$0xff] (!%p2456_p7)  }
  0x7e   : > { %2685 = vmatpush3.bf16.msra.mxu1 %v2917_v18  ;;  %2664 = vmatprep.subr.bf16.mxu0 %v2918_v19  ;;  %v2934_v35 = vld [vmem:[#allocation8 + $0x70] sm:$0xff]   ;;  %v2938_v39 = vld [vmem:[#allocation8 + $0x78] sm:$0xff]   ;;  %v2942_v45 = vld [vmem:[#allocation8 + $0x140] sm:$0xff]  }
  0x7f   : > { %2686 = vmatprep.subr.bf16.mxu1 %v2919_v20  ;;  %v2935_v36 = vld [vmem:[#allocation8 + $0xf0] sm:$0xff]   ;;  %v2939_v40 = vld [vmem:[#allocation8 + $0xf8] sm:$0xff]   ;;  %v2943_v46 = vld [vmem:[#allocation8 + $0x1c0] sm:$0xff]  }
  0x80   : > { %v2936_v37 = vld [vmem:[#allocation8 + $0x30] sm:$0xff]   ;;  %v2940_v41 = vld [vmem:[#allocation8 + $0x38] sm:$0xff]   ;;  %v2944_v48 = vld [vmem:[#allocation8 + $0x100] sm:$0xff]  }
  0x81   : > { %2665 = vmatpush3.bf16.msra.mxu0 %v2920_v21  ;;  %v2937_v38 = vld [vmem:[#allocation8 + $0xb0] sm:$0xff]   ;;  %v2941_v42 = vld [vmem:[#allocation8 + $0xb8] sm:$0xff]   ;;  %v2945_v50 = vld [vmem:[#allocation8 + $0x180] sm:$0xff]  }
  0x82   : > { %2687 = vmatpush3.bf16.msra.mxu1 %v2921_v22  ;;  %2666 = vmatprep.subr.bf16.mxu0 %v2922_v23  ;;  %v2946_v51 = vld [vmem:[#allocation8 + $0x148] sm:$0xff]   ;;  %v2950_v55 = vld [vmem:[#allocation8 + $0x150] sm:$0xff]   ;;  %v2954_v59 = vld [vmem:[#allocation8 + $0x158] sm:$0xff]   ;;  %v350_v23 = vpack.c.bf16 %v3366_v4, %v3366_v4 }
  0x83   : > { %2688 = vmatprep.subr.bf16.mxu1 %v2923_v24  ;;  %v2947_v52 = vld [vmem:[#allocation8 + $0x1c8] sm:$0xff]   ;;  %v2951_v56 = vld [vmem:[#allocation8 + $0x1d0] sm:$0xff]   ;;  %v2955_v60 = vld [vmem:[#allocation8 + $0x1d8] sm:$0xff]   ;;  %v352_v24 = vpack.c.bf16 %v3376_v6, %v3376_v6 }
  0x84   : > { %v2948_v53 = vld [vmem:[#allocation8 + $0x108] sm:$0xff]   ;;  %v2952_v57 = vld [vmem:[#allocation8 + $0x110] sm:$0xff]   ;;  %v2956_v61 = vld [vmem:[#allocation8 + $0x118] sm:$0xff]  }
  0x85   : > { %2667 = vmatpush3.bf16.msra.mxu0 %v2924_v25  ;;  %v2949_v54 = vld [vmem:[#allocation8 + $0x188] sm:$0xff]   ;;  %v2953_v58 = vld [vmem:[#allocation8 + $0x190] sm:$0xff]   ;;  %v2957_v62 = vld [vmem:[#allocation8 + $0x198] sm:$0xff]  }
  0x86   : > { %2689 = vmatpush3.bf16.msra.mxu1 %v2925_v26  ;;  %2668 = vmatprep.subr.bf16.mxu0 %v2926_v27  ;;  %v2958_v63 = vld [vmem:[#allocation8 + $0x160] sm:$0xff]   ;;  %v2962_v11 = vld [vmem:[#allocation8 + $0x168] sm:$0xff]   ;;  %v2966_v15 = vld [vmem:[#allocation8 + $0x170] sm:$0xff]  }
  0x87   : > { %2690 = vmatprep.subr.bf16.mxu1 %v2927_v28  ;;  %v2959_v8 = vld [vmem:[#allocation8 + $0x1e0] sm:$0xff]   ;;  %v2963_v12 = vld [vmem:[#allocation8 + $0x1e8] sm:$0xff]   ;;  %v2967_v16 = vld [vmem:[#allocation8 + $0x1f0] sm:$0xff]  }
  0x88   : > { %v2960_v9 = vld [vmem:[#allocation8 + $0x120] sm:$0xff]   ;;  %v2964_v13 = vld [vmem:[#allocation8 + $0x128] sm:$0xff]   ;;  %v2968_v17 = vld [vmem:[#allocation8 + $0x130] sm:$0xff]  }
  0x89   : > { %2669 = vmatpush3.bf16.msra.mxu0 %v2928_v29  ;;  %v2961_v10 = vld [vmem:[#allocation8 + $0x1a0] sm:$0xff]   ;;  %v2965_v14 = vld [vmem:[#allocation8 + $0x1a8] sm:$0xff]   ;;  %v2969_v18 = vld [vmem:[#allocation8 + $0x1b0] sm:$0xff]  }
  0x8a   : > { %2691 = vmatpush3.bf16.msra.mxu1 %v2929_v30  ;;  %2670 = vmatprep.subr.bf16.mxu0 %v2930_v31  ;;  %v2970_v19 = vld [vmem:[#allocation8 + $0x178] sm:$0xff]  }
  0x8b   : > { %2692 = vmatprep.subr.bf16.mxu1 %v2931_v32  ;;  %v2971_v20 = vld [vmem:[#allocation8 + $0x1f8] sm:$0xff]  }
  0x8c   : > { %v2972_v21 = vld [vmem:[#allocation8 + $0x138] sm:$0xff]  }
  0x8d   : > { %2671 = vmatpush3.bf16.msra.mxu0 %v2932_v33  ;;  %v2973_v22 = vld [vmem:[#allocation8 + $0x1b8] sm:$0xff]  }
  0x8e   : > { %2693 = vmatpush3.bf16.msra.mxu1 %v2933_v34  ;;  %2672 = vmatprep.subr.bf16.mxu0 %v2934_v35 }
  0x8f   : > { %2694 = vmatprep.subr.bf16.mxu1 %v2935_v36 }
  0x91   : > { %2673 = vmatpush3.bf16.msra.mxu0 %v2936_v37 }
  0x92   : > { %2695 = vmatpush3.bf16.msra.mxu1 %v2937_v38  ;;  %2674 = vmatprep.subr.bf16.mxu0 %v2938_v39 }
  0x93   : > { %2696 = vmatprep.subr.bf16.mxu1 %v2939_v40 }
  0x95   : > { %2675 = vmatpush3.bf16.msra.mxu0 %v2940_v41 }
  0x96   : > { %2697 = vmatpush3.bf16.msra.mxu1 %v2941_v42  ;;  %2704 = vmatprep.subr.bf16.mxu0 %v2942_v45 }
  0x97   : > { %2726 = vmatprep.subr.bf16.mxu1 %v2943_v46 }
  0x98   : > { %899 = vmatmul.mubr.bf16.vlgmr.msra.gmra.mrb[0].mxu0 %v346_v43 }
  0x99   : > { %939 = vmatmul.mubr.bf16.vlgmr.msra.gmra.mrb[0].mxu1 %v348_v44  ;;  %2705 = vmatpush3.bf16.msra.mxu0 %v2944_v48 }
  0x9a   : > { %2727 = vmatpush3.bf16.msra.mxu1 %v2945_v50  ;;  %978 = vmatprep.mubr.bf16.mxu0 %v351_v47  ;;  %v345_v47 = vld [vmem:[#allocation2] sm:$0xff] }
  0x9b   : > { %2706 = vmatprep.subr.bf16.mxu0 %v2946_v51  ;;  %1018 = vmatprep.mubr.bf16.mxu1 %v353_v49 }
  0x9c   : > { %2728 = vmatprep.subr.bf16.mxu1 %v2947_v52 }
  0x9d   : > { %2707 = vmatpush3.bf16.msra.mxu0 %v2948_v53 }
  0x9e   : > { %2729 = vmatpush3.bf16.msra.mxu1 %v2949_v54  ;;  %2708 = vmatprep.subr.bf16.mxu0 %v2950_v55 }
  0x9f   : > { %2730 = vmatprep.subr.bf16.mxu1 %v2951_v56 }
  0xa1   : > { %2709 = vmatpush3.bf16.msra.mxu0 %v2952_v57 }
  0xa2   : > { %2731 = vmatpush3.bf16.msra.mxu1 %v2953_v58  ;;  %2710 = vmatprep.subr.bf16.mxu0 %v2954_v59 }
  0xa3   : > { %2732 = vmatprep.subr.bf16.mxu1 %v2955_v60 }
  0xa5   : > { %2711 = vmatpush3.bf16.msra.mxu0 %v2956_v61 }
  0xa6   : > { %2733 = vmatpush3.bf16.msra.mxu1 %v2957_v62  ;;  %2712 = vmatprep.subr.bf16.mxu0 %v2958_v63 }
  0xa7   : > { %2734 = vmatprep.subr.bf16.mxu1 %v2959_v8 }
  0xa9   : > { %2713 = vmatpush3.bf16.msra.mxu0 %v2960_v9 }
  0xaa   : > { %2735 = vmatpush3.bf16.msra.mxu1 %v2961_v10  ;;  %2714 = vmatprep.subr.bf16.mxu0 %v2962_v11 }
  0xab   : > { %2736 = vmatprep.subr.bf16.mxu1 %v2963_v12 }
  0xad   : > { %2715 = vmatpush3.bf16.msra.mxu0 %v2964_v13 }
  0xae   : > { %2737 = vmatpush3.bf16.msra.mxu1 %v2965_v14  ;;  %2716 = vmatprep.subr.bf16.mxu0 %v2966_v15 }
  0xaf   : > { %2738 = vmatprep.subr.bf16.mxu1 %v2967_v16 }
  0xb1   : > { %2717 = vmatpush3.bf16.msra.mxu0 %v2968_v17 }
  0xb2   : > { %2739 = vmatpush3.bf16.msra.mxu1 %v2969_v18  ;;  %2718 = vmatprep.subr.bf16.mxu0 %v2970_v19 }
  0xb3   : > { %2740 = vmatprep.subr.bf16.mxu1 %v2971_v20 }
  0xb5   : > { %2719 = vmatpush3.bf16.msra.mxu0 %v2972_v21 }
  0xb6   : > { %2741 = vmatpush3.bf16.msra.mxu1 %v2973_v22 }
  0xb8   : > { %979 = vmatmul.mubr.bf16.vlgmr.msra.gmra.mrb[4].mxu0 %v350_v23 }
  0xb9   : > { %1019 = vmatmul.mubr.bf16.vlgmr.msra.gmra.mrb[4].mxu1 %v352_v24 }
 0x16b   : > { %v2676_v25 = vpop.f32.mrb[0].mxu0 }
 0x16c   : > { %v2698_v26 = vpop.f32.mrb[0].mxu1  ;;  %v2677_v27 = vpop.f32.mrb[1].mxu0 }
 0x16d   : > { %v2678_v28 = vadd.f32 %v2677_v27, %v2676_v25  ;;  %v2699_v29 = vpop.f32.mrb[1].mxu1  ;;  %v2679_v30 = vpop.f32.mrb[2].mxu0 }
 0x16e   : > { %v2700_v31 = vadd.f32 %v2699_v29, %v2698_v26  ;;  %v2701_v32 = vpop.f32.mrb[2].mxu1  ;;  %v2680_v33 = vpop.f32.mrb[3].mxu0 }
 0x16f   : > { %v2702_v34 = vpop.f32.mrb[3].mxu1 }
 0x170   : > { %v941_v35 = vadd.f32 %v2700_v31, %v2678_v28 }
 0x18b   : > { %v2720_v36 = vpop.f32.mrb[4].mxu0 }
 0x18c   : > { %v2742_v37 = vpop.f32.mrb[4].mxu1  ;;  %v2721_v38 = vpop.f32.mrb[5].mxu0 }
 0x18d   : > { %v2722_v39 = vadd.f32 %v2721_v38, %v2720_v36  ;;  %v2743_v40 = vpop.f32.mrb[5].mxu1  ;;  %v2723_v41 = vpop.f32.mrb[6].mxu0 }
 0x18e   : > { %v2744_v42 = vadd.f32 %v2743_v40, %v2742_v37  ;;  %v2745_v43 = vpop.f32.mrb[6].mxu1  ;;  %v2724_v44 = vpop.f32.mrb[7].mxu0 }
 0x18f   : > { %v981_v45 = vadd.f32 %v2722_v39, %v941_v35  ;;  %v2746_v46 = vpop.f32.mrb[7].mxu1 }
 0x191   : > { %v1021_v48 = vadd.f32 %v2744_v42, %v981_v45 }
 0x193   : > { %v1026_v49 = vadd.f32 %v1021_v48, %v345_v47 }
 0x195   : > { %1027 = vst [vmem:[#allocation2] sm:$0xff] %v1026_v49 }
 0x196 PF: > { %p1028_p8 = scmp.eq.s32.totalorder %s3174_s23, 1 }
 0x198   : > { %1032 = sbr.rel (!%p1028_p8) target bundleno = 416 (0x1a0), region = 60 }
 0x19c   : > { %v1033_v50 = vld [vmem:[#allocation2] sm:$0xff] (%p1028_p8) }
 0x19d   : > { %v1034_v51 = vpack.c.bf16 (%p1028_p8), %v1033_v50, %v1033_v50 }
 0x19f   : > { %1035 = vst [vmem:[#allocation4] sm:$0xf] %v1034_v51 }
 0x1a0 PF: > { %p2522_p9 = scmp.ne.s32.totalorder %s3174_s23, 1 }
 0x1a1   : > { %v1040_v52 = vld [vmem:[#allocation11] sm:$0xff] (!%p2522_p9)  ;;  %v1041_v54 = vld [vmem:[#allocation11 + $0x8] sm:$0xff] (!%p2522_p9)  ;;  %v3193_v60 = vmov (!%p2522_p9), 0  }
 0x1a2   : > { %1038 = sbr.rel (%p2522_p9) target bundleno = 923 (0x39b), region = 64  ;;  %v1044_v53 = vld [vmem:[#allocation11 + $0x20] sm:$0xff] (!%p2522_p9)  ;;  %v1045_v56 = vld [vmem:[#allocation11 + $0x28] sm:$0xff] (!%p2522_p9)  ;;  %1456 = vmatprep.mubr.bf16.mxu0 (!%p2522_p9), %v3193_v60  ;;  %1497 = vmatprep.mubr.bf16.mxu1 (!%p2522_p9), %v3193_v60 }
 0x1a3   : > { %v2524_v55 = vcombine.high (!%p2522_p9), %v1040_v52, %v1044_v53  ;;  %v2523_v57 = vcombine.low (!%p2522_p9), %v1040_v52, %v1044_v53  ;;  %v1048_v58 = vld [vmem:[#allocation11 + $0x40] sm:$0xff] (!%p2522_p9)  ;;  %v2526_v61 = vcombine.high (!%p2522_p9), %v1041_v54, %v1045_v56  ;;  %v2525_v62 = vcombine.low (!%p2522_p9), %v1041_v54, %v1045_v56  ;;  %v1049_v8 = vld [vmem:[#allocation11 + $0x48] sm:$0xff] (!%p2522_p9)  ;;  %v1042_v56 = vld [vmem:[#allocation11 + $0x10] sm:$0xff] (!%p2522_p9) }
 0x1a4   : > { %v1052_v59 = vld [vmem:[#allocation11 + $0x60] sm:$0xff] (!%p2522_p9)  ;;  %v1053_v9 = vld [vmem:[#allocation11 + $0x68] sm:$0xff] (!%p2522_p9) }
 0x1a5   : > { %v2532_v63 = vcombine.high (!%p2522_p9), %v1048_v58, %v1052_v59  ;;  %v1056_v10 = vld [vmem:[#allocation11 + $0x80] sm:$0xff] (!%p2522_p9)  ;;  %1424 = vmatprep.subr.bf16.mxu0 (!%p2522_p9), %v2524_v55  ;;  %v2534_v11 = vcombine.high (!%p2522_p9), %v1049_v8, %v1053_v9  ;;  %v1057_v13 = vld [vmem:[#allocation11 + $0x88] sm:$0xff] (!%p2522_p9)  ;;  %1465 = vmatprep.subr.bf16.mxu1 (!%p2522_p9), %v2526_v61  ;;  %v2531_v15 = vcombine.low (!%p2522_p9), %v1048_v58, %v1052_v59  ;;  %v1046_v59 = vld [vmem:[#allocation11 + $0x30] sm:$0xff] (!%p2522_p9) }
 0x1a6   : > { %v1060_v12 = vld [vmem:[#allocation11 + $0xa0] sm:$0xff] (!%p2522_p9)  ;;  %v1061_v14 = vld [vmem:[#allocation11 + $0xa8] sm:$0xff] (!%p2522_p9)  ;;  %1425 = vmatpush1.bf16.msra.mxu0 (!%p2522_p9), %v2523_v57  ;;  %1466 = vmatpush1.bf16.msra.mxu1 (!%p2522_p9), %v2525_v62  ;;  %v2533_v16 = vcombine.low (!%p2522_p9), %v1049_v8, %v1053_v9  ;;  %v1043_v62 = vld [vmem:[#allocation11 + $0x18] sm:$0xff] (!%p2522_p9) }
 0x1a7   : > { %1426 = vmatprep.subr.bf16.mxu0 (!%p2522_p9), %v2532_v63  ;;  %v2540_v17 = vcombine.high (!%p2522_p9), %v1056_v10, %v1060_v12  ;;  %1467 = vmatprep.subr.bf16.mxu1 (!%p2522_p9), %v2534_v11  ;;  %v2542_v18 = vcombine.high (!%p2522_p9), %v1057_v13, %v1061_v14  ;;  %v1064_v19 = vld [vmem:[#allocation11 + $0xc0] sm:$0xff] (!%p2522_p9)  ;;  %v1065_v21 = vld [vmem:[#allocation11 + $0xc8] sm:$0xff] (!%p2522_p9)  ;;  %v2539_v23 = vcombine.low (!%p2522_p9), %v1056_v10, %v1060_v12  ;;  %v1047_v63 = vld [vmem:[#allocation11 + $0x38] sm:$0xff] (!%p2522_p9) }
 0x1a8   : > { %v1068_v20 = vld [vmem:[#allocation11 + $0xe0] sm:$0xff] (!%p2522_p9)  ;;  %v1069_v22 = vld [vmem:[#allocation11 + $0xe8] sm:$0xff] (!%p2522_p9)  ;;  %v2541_v24 = vcombine.low (!%p2522_p9), %v1057_v13, %v1061_v14  ;;  %v1050_v9 = vld [vmem:[#allocation11 + $0x50] sm:$0xff] (!%p2522_p9)  ;;  %v2528_v11 = vcombine.high (!%p2522_p9), %v1042_v56, %v1046_v59  ;;  %v2530_v14 = vcombine.high (!%p2522_p9), %v1043_v62, %v1047_v63 }
 0x1a9   : > { %v2548_v25 = vcombine.high %v1064_v19, %v1068_v20  ;;  %v2550_v26 = vcombine.high %v1065_v21, %v1069_v22  ;;  %v1072_v27 = vld [vmem:[#allocation11 + $0x100] sm:$0xff]  ;;  %v1073_v29 = vld [vmem:[#allocation11 + $0x108] sm:$0xff]  ;;  %v2547_v31 = vcombine.low %v1064_v19, %v1068_v20  ;;  %v2549_v32 = vcombine.low %v1065_v21, %v1069_v22  ;;  %v1054_v12 = vld [vmem:[#allocation11 + $0x70] sm:$0xff] }
 0x1aa   : > { %1427 = vmatpush1.bf16.msra.mxu0 %v2531_v15  ;;  %1468 = vmatpush1.bf16.msra.mxu1 %v2533_v16  ;;  %v1076_v28 = vld [vmem:[#allocation11 + $0x120] sm:$0xff]  ;;  %v1077_v30 = vld [vmem:[#allocation11 + $0x128] sm:$0xff]  ;;  %v3406_v13 = vld [vmem:[#allocation4] sm:$0xf]  ;;  %v2529_v19 = vcombine.low %v1043_v62, %v1047_v63  ;;  %v2536_v20 = vcombine.high %v1050_v9, %v1054_v12 }
 0x1ab   : > { %1428 = vmatprep.subr.bf16.mxu0 %v2540_v17  ;;  %1469 = vmatprep.subr.bf16.mxu1 %v2542_v18  ;;  %v2556_v33 = vcombine.high %v1072_v27, %v1076_v28  ;;  %v2558_v34 = vcombine.high %v1073_v29, %v1077_v30  ;;  %v1080_v35 = vld [vmem:[#allocation11 + $0x140] sm:$0xff]  ;;  %v1081_v37 = vld [vmem:[#allocation11 + $0x148] sm:$0xff]  ;;  %v2555_v39 = vcombine.low %v1072_v27, %v1076_v28  ;;  %v1051_v15 = vld [vmem:[#allocation11 + $0x58] sm:$0xff] }
 0x1ac   : > { %v1084_v36 = vld [vmem:[#allocation11 + $0x160] sm:$0xff]  ;;  %v1085_v38 = vld [vmem:[#allocation11 + $0x168] sm:$0xff]  ;;  %v2557_v40 = vcombine.low %v1073_v29, %v1077_v30  ;;  %v1055_v16 = vld [vmem:[#allocation11 + $0x78] sm:$0xff]  ;;  %v2527_v17 = vcombine.low %v1042_v56, %v1046_v59 }
 0x1ad   : > { %v2564_v41 = vcombine.high %v1080_v35, %v1084_v36  ;;  %v2566_v42 = vcombine.high %v1081_v37, %v1085_v38  ;;  %v1088_v43 = vld [vmem:[#allocation11 + $0x180] sm:$0xff]  ;;  %v1089_v45 = vld [vmem:[#allocation11 + $0x188] sm:$0xff]  ;;  %v2563_v47 = vcombine.low %v1080_v35, %v1084_v36  ;;  %v2565_v48 = vcombine.low %v1081_v37, %v1085_v38  ;;  %v1058_v18 = vld [vmem:[#allocation11 + $0x90] sm:$0xff] }
 0x1ae   : > { %1429 = vmatpush1.bf16.msra.mxu0 %v2539_v23  ;;  %1470 = vmatpush1.bf16.msra.mxu1 %v2541_v24  ;;  %v1092_v44 = vld [vmem:[#allocation11 + $0x1a0] sm:$0xff]  ;;  %v1093_v46 = vld [vmem:[#allocation11 + $0x1a8] sm:$0xff]  ;;  %v1062_v21 = vld [vmem:[#allocation11 + $0xb0] sm:$0xff]  ;;  %v2538_v22 = vcombine.high %v1051_v15, %v1055_v16  ;;  %v2537_v27 = vcombine.low %v1051_v15, %v1055_v16 }
 0x1af   : > { %1430 = vmatprep.subr.bf16.mxu0 %v2548_v25  ;;  %1471 = vmatprep.subr.bf16.mxu1 %v2550_v26  ;;  %v2572_v49 = vcombine.high %v1088_v43, %v1092_v44  ;;  %v1096_v50 = vld [vmem:[#allocation11 + $0x1c0] sm:$0xff]  ;;  %v2574_v52 = vcombine.high %v1089_v45, %v1093_v46  ;;  %v1097_v53 = vld [vmem:[#allocation11 + $0x1c8] sm:$0xff]  ;;  %v2571_v55 = vcombine.low %v1088_v43, %v1092_v44  ;;  %v1059_v23 = vld [vmem:[#allocation11 + $0x98] sm:$0xff] }
 0x1b0   : > { %v1100_v51 = vld [vmem:[#allocation11 + $0x1e0] sm:$0xff]  ;;  %v1101_v54 = vld [vmem:[#allocation11 + $0x1e8] sm:$0xff]  ;;  %v2573_v57 = vcombine.low %v1089_v45, %v1093_v46  ;;  %v1063_v24 = vld [vmem:[#allocation11 + $0xb8] sm:$0xff]  ;;  %v2535_v25 = vcombine.low %v1050_v9, %v1054_v12  ;;  %v2544_v28 = vcombine.high %v1058_v18, %v1062_v21 }
 0x1b1   : > { %v2580_v58 = vcombine.high %v1096_v50, %v1100_v51  ;;  %v2582_v61 = vcombine.high %v1097_v53, %v1101_v54  ;;  %v2579_v8 = vcombine.low %v1096_v50, %v1100_v51  ;;  %v2581_v10 = vcombine.low %v1097_v53, %v1101_v54  ;;  %v1066_v26 = vld [vmem:[#allocation11 + $0xd0] sm:$0xff]  ;;  %v1083_v46 = vld [vmem:[#allocation11 + $0x158] sm:$0xff]  ;;  %v2975_v16 = vld [vmem:[#allocation13 + $0xc0] sm:$0xff]  }
 0x1b2   : > { %1431 = vmatpush1.bf16.msra.mxu0 %v2547_v31  ;;  %1472 = vmatpush1.bf16.msra.mxu1 %v2549_v32  ;;  %v1070_v29 = vld [vmem:[#allocation11 + $0xf0] sm:$0xff]  ;;  %v2546_v30 = vcombine.high %v1059_v23, %v1063_v24  ;;  %v1067_v31 = vld [vmem:[#allocation11 + $0xd8] sm:$0xff]  ;;  %v2545_v35 = vcombine.low %v1059_v23, %v1063_v24  ;;  %v2981_v23 = vld [vmem:[#allocation13 + $0x88] sm:$0xff]  }
 0x1b3   : > { %1432 = vmatprep.subr.bf16.mxu0 %v2556_v33  ;;  %1473 = vmatprep.subr.bf16.mxu1 %v2558_v34  ;;  %v1071_v32 = vld [vmem:[#allocation11 + $0xf8] sm:$0xff]  ;;  %v2543_v33 = vcombine.low %v1058_v18, %v1062_v21  ;;  %v1074_v34 = vld [vmem:[#allocation11 + $0x110] sm:$0xff]  ;;  %v2552_v36 = vcombine.high %v1066_v26, %v1070_v29  ;;  %v2976_v18 = vld [vmem:[#allocation13] sm:$0xff]  }
 0x1b4   : > { %v1078_v37 = vld [vmem:[#allocation11 + $0x130] sm:$0xff]  ;;  %v2554_v38 = vcombine.high %v1067_v31, %v1071_v32  ;;  %v2553_v43 = vcombine.low %v1067_v31, %v1071_v32  ;;  %v1091_v53 = vld [vmem:[#allocation11 + $0x198] sm:$0xff]  ;;  %v2979_v21 = vld [vmem:[#allocation13 + $0xc8] sm:$0xff]  }
 0x1b5   : > { %v2560_v44 = vcombine.high %v1074_v34, %v1078_v37  ;;  %v1094_v50 = vld [vmem:[#allocation11 + $0x1b0] sm:$0xff]  ;;  %v1095_v54 = vld [vmem:[#allocation11 + $0x1b8] sm:$0xff]  ;;  %v2990_v32 = vld [vmem:[#allocation13 + $0x60] sm:$0xff]  }
 0x1b6   : > { %1433 = vmatpush1.bf16.msra.mxu0 %v2555_v39  ;;  %1474 = vmatpush1.bf16.msra.mxu1 %v2557_v40  ;;  %v1075_v39 = vld [vmem:[#allocation11 + $0x118] sm:$0xff]  ;;  %v2982_v24 = vld [vmem:[#allocation13 + $0x50] sm:$0xff]  }
 0x1b7   : > { %1434 = vmatprep.subr.bf16.mxu0 %v2564_v41  ;;  %1475 = vmatprep.subr.bf16.mxu1 %v2566_v42  ;;  %v1079_v40 = vld [vmem:[#allocation11 + $0x138] sm:$0xff]  ;;  %v2551_v41 = vcombine.low %v1066_v26, %v1070_v29  ;;  %v1082_v42 = vld [vmem:[#allocation11 + $0x150] sm:$0xff] }
 0x1b8   : > { %v2562_v45 = vcombine.high %v1075_v39, %v1079_v40  ;;  %v2561_v51 = vcombine.low %v1075_v39, %v1079_v40  ;;  %v1099_v62 = vld [vmem:[#allocation11 + $0x1d8] sm:$0xff]  ;;  %v2984_v26 = vld [vmem:[#allocation13 + $0x10] sm:$0xff]  }
 0x1b9   : > { %v1103_v63 = vld [vmem:[#allocation11 + $0x1f8] sm:$0xff]  ;;  %v2998_v39 = vld [vmem:[#allocation13 + $0x70] sm:$0xff]  }
 0x1ba   : > { %1435 = vmatpush1.bf16.msra.mxu0 %v2563_v47  ;;  %1476 = vmatpush1.bf16.msra.mxu1 %v2565_v48  ;;  %v1087_v47 = vld [vmem:[#allocation11 + $0x178] sm:$0xff]  ;;  %v2559_v48 = vcombine.low %v1074_v34, %v1078_v37  ;;  %v2586_v12 = vcombine.high %v1099_v62, %v1103_v63  ;;  %v2993_v34 = vld [vmem:[#allocation13 + $0xa0] sm:$0xff]   ;;  %v2996_v37 = vld [vmem:[#allocation13 + $0x28] sm:$0xff]  }
 0x1bb   : > { %1436 = vmatprep.subr.bf16.mxu0 %v2572_v49  ;;  %1477 = vmatprep.subr.bf16.mxu1 %v2574_v52  ;;  %v1090_v49 = vld [vmem:[#allocation11 + $0x190] sm:$0xff]  ;;  %v2569_v59 = vcombine.low %v1083_v46, %v1087_v47  ;;  %v2987_v29 = vld [vmem:[#allocation13 + $0xd8] sm:$0xff]  }
 0x1bc   : > { %v2575_v9 = vcombine.low %v1090_v49, %v1094_v50  ;;  %v2989_v31 = vld [vmem:[#allocation13 + $0x98] sm:$0xff]   ;;  %v2999_v40 = vld [vmem:[#allocation13 + $0xf0] sm:$0xff]  }
 0x1be   : > { %1437 = vmatpush1.bf16.msra.mxu0 %v2571_v55  ;;  %1478 = vmatpush1.bf16.msra.mxu1 %v2573_v57  ;;  %v2570_v55 = vcombine.high %v1083_v46, %v1087_v47  ;;  %v1098_v57 = vld [vmem:[#allocation11 + $0x1d0] sm:$0xff]  ;;  %v3006_v46 = vld [vmem:[#allocation13 + $0x140] sm:$0xff]  }
 0x1bf   : > { %1438 = vmatprep.subr.bf16.mxu0 %v2580_v58  ;;  %1479 = vmatprep.subr.bf16.mxu1 %v2582_v61  ;;  %v1102_v58 = vld [vmem:[#allocation11 + $0x1f0] sm:$0xff]  ;;  %v2576_v61 = vcombine.high %v1090_v49, %v1094_v50  ;;  %v3007_v47 = vld [vmem:[#allocation13 + $0x1c0] sm:$0xff]  }
 0x1c0   : > { %v2583_v15 = vcombine.low %v1098_v57, %v1102_v58 }
 0x1c2   : > { %1439 = vmatpush1.bf16.msra.mxu0 %v2579_v8  ;;  %1480 = vmatpush1.bf16.msra.mxu1 %v2581_v10  ;;  %v2578_v8 = vcombine.high %v1091_v53, %v1095_v54  ;;  %v2577_v10 = vcombine.low %v1091_v53, %v1095_v54  ;;  %v1604_v53 = vld [vmem:[#allocation5] sm:$0xff] }
 0x1c3   : > { %1506 = vmatprep.subr.bf16.mxu0 %v2528_v11  ;;  %1547 = vmatprep.subr.bf16.mxu1 %v2530_v14  ;;  %v2584_v11 = vcombine.high %v1098_v57, %v1102_v58  ;;  %v2974_v14 = vld [vmem:[#allocation13 + $0x40] sm:$0xff]  }
 0x1c5   : > { %1457 = vmatmul.mubr.bf16.vlgmr.msra.gmra.mrb[0].mxu0 %v3406_v13  ;;  %1498 = vmatmul.mubr.bf16.vlgmr.msra.gmra.mrb[0].mxu1 %v3406_v13 }
 0x1c6   : > { %1507 = vmatpush1.bf16.msra.mxu0 %v2527_v17  ;;  %1548 = vmatpush1.bf16.msra.mxu1 %v2529_v19  ;;  %v2585_v17 = vcombine.low %v1099_v62, %v1103_v63  ;;  %v2977_v19 = vld [vmem:[#allocation13 + $0x80] sm:$0xff]  }
 0x1c7   : > { %1508 = vmatprep.subr.bf16.mxu0 %v2536_v20  ;;  %1549 = vmatprep.subr.bf16.mxu1 %v2538_v22  ;;  %v2978_v20 = vld [vmem:[#allocation13 + $0x48] sm:$0xff]  }
 0x1c8   : > { %1538 = vmatprep.mubr.bf16.mxu0 %v3193_v60  ;;  %1579 = vmatprep.mubr.bf16.mxu1 %v3193_v60  ;;  %v1086_v60 = vld [vmem:[#allocation11 + $0x170] sm:$0xff]  ;;  %v2980_v22 = vld [vmem:[#allocation13 + $0x8] sm:$0xff]  }
 0x1c9   : > { %v2568_v52 = vcombine.high %v1082_v42, %v1086_v60  ;;  %v2567_v56 = vcombine.low %v1082_v42, %v1086_v60  ;;  %v3001_v42 = vld [vmem:[#allocation13 + $0xb0] sm:$0xff]   ;;  %v3004_v60 = vld [vmem:[#allocation13 + $0x38] sm:$0xff]  }
 0x1ca   : > { %1509 = vmatpush1.bf16.msra.mxu0 %v2535_v25  ;;  %1550 = vmatpush1.bf16.msra.mxu1 %v2537_v27  ;;  %v2983_v25 = vld [vmem:[#allocation13 + $0xd0] sm:$0xff]  }
 0x1cb   : > { %1510 = vmatprep.subr.bf16.mxu0 %v2544_v28  ;;  %1551 = vmatprep.subr.bf16.mxu1 %v2546_v30  ;;  %v2985_v27 = vld [vmem:[#allocation13 + $0x90] sm:$0xff]   ;;  %v2986_v28 = vld [vmem:[#allocation13 + $0x58] sm:$0xff]  }
 0x1cc   : > { %v2988_v30 = vld [vmem:[#allocation13 + $0x18] sm:$0xff]  }
 0x1ce   : > { %1511 = vmatpush1.bf16.msra.mxu0 %v2543_v33  ;;  %1552 = vmatpush1.bf16.msra.mxu1 %v2545_v35  ;;  %v2992_v33 = vld [vmem:[#allocation13 + $0x20] sm:$0xff]   ;;  %v2994_v35 = vld [vmem:[#allocation13 + $0x68] sm:$0xff]  }
 0x1cf   : > { %1512 = vmatprep.subr.bf16.mxu0 %v2552_v36  ;;  %1553 = vmatprep.subr.bf16.mxu1 %v2554_v38  ;;  %v2995_v36 = vld [vmem:[#allocation13 + $0xe8] sm:$0xff]  }
 0x1d0   : > { %v2997_v38 = vld [vmem:[#allocation13 + $0xa8] sm:$0xff]  }
 0x1d2   : > { %1513 = vmatpush1.bf16.msra.mxu0 %v2551_v41  ;;  %1554 = vmatpush1.bf16.msra.mxu1 %v2553_v43  ;;  %v3000_v41 = vld [vmem:[#allocation13 + $0x30] sm:$0xff]   ;;  %v3002_v43 = vld [vmem:[#allocation13 + $0x78] sm:$0xff]  }
 0x1d3   : > { %1514 = vmatprep.subr.bf16.mxu0 %v2560_v44  ;;  %1555 = vmatprep.subr.bf16.mxu1 %v2562_v45  ;;  %v3003_v44 = vld [vmem:[#allocation13 + $0xf8] sm:$0xff]  }
 0x1d4   : > { %v3005_v45 = vld [vmem:[#allocation13 + $0xb8] sm:$0xff]  }
 0x1d6   : > { %1515 = vmatpush1.bf16.msra.mxu0 %v2559_v48  ;;  %1556 = vmatpush1.bf16.msra.mxu1 %v2561_v51 }
 0x1d7   : > { %1516 = vmatprep.subr.bf16.mxu0 %v2568_v52  ;;  %1557 = vmatprep.subr.bf16.mxu1 %v2570_v55 }
 0x1da   : > { %1517 = vmatpush1.bf16.msra.mxu0 %v2567_v56  ;;  %1558 = vmatpush1.bf16.msra.mxu1 %v2569_v59 }
 0x1db   : > { %1518 = vmatprep.subr.bf16.mxu0 %v2576_v61  ;;  %1559 = vmatprep.subr.bf16.mxu1 %v2578_v8  ;;  %v3008_v61 = vld [vmem:[#allocation13 + $0x100] sm:$0xff]  }
 0x1de   : > { %1519 = vmatpush1.bf16.msra.mxu0 %v2575_v9  ;;  %1560 = vmatpush1.bf16.msra.mxu1 %v2577_v10  ;;  %v3009_v10 = vld [vmem:[#allocation13 + $0x180] sm:$0xff]  }
 0x1df   : > { %1520 = vmatprep.subr.bf16.mxu0 %v2584_v11  ;;  %1561 = vmatprep.subr.bf16.mxu1 %v2586_v12  ;;  %v3010_v11 = vld [vmem:[#allocation13 + $0x148] sm:$0xff]  }
 0x1e2   : > { %1521 = vmatpush1.bf16.msra.mxu0 %v2583_v15  ;;  %1562 = vmatpush1.bf16.msra.mxu1 %v2585_v17 }
 0x1e3   : > { %2748 = vmatprep.subr.bf16.mxu0 %v2974_v14  ;;  %2770 = vmatprep.subr.bf16.mxu1 %v2975_v16  ;;  %v3011_v14 = vld [vmem:[#allocation13 + $0x1c8] sm:$0xff]  }
 0x1e5   : > { %1539 = vmatmul.mubr.bf16.vlgmr.msra.gmra.mrb[4].mxu0 %v3406_v13  ;;  %1580 = vmatmul.mubr.bf16.vlgmr.msra.gmra.mrb[4].mxu1 %v3406_v13  ;;  %v2991_v13 = vld [vmem:[#allocation13 + $0xe0] sm:$0xff]  }
 0x1e6   : > { %2749 = vmatpush3.bf16.msra.mxu0 %v2976_v18  ;;  %2771 = vmatpush3.bf16.msra.mxu1 %v2977_v19  ;;  %v3013_v18 = vld [vmem:[#allocation13 + $0x188] sm:$0xff]   ;;  %v3014_v19 = vld [vmem:[#allocation13 + $0x150] sm:$0xff]  }
 0x1e7   : > { %2750 = vmatprep.subr.bf16.mxu0 %v2978_v20  ;;  %2772 = vmatprep.subr.bf16.mxu1 %v2979_v21  ;;  %v3015_v20 = vld [vmem:[#allocation13 + $0x1d0] sm:$0xff]  }
 0x1ea   : > { %2751 = vmatpush3.bf16.msra.mxu0 %v2980_v22  ;;  %2773 = vmatpush3.bf16.msra.mxu1 %v2981_v23  ;;  %v3016_v23 = vld [vmem:[#allocation13 + $0x110] sm:$0xff]  }
 0x1eb   : > { %2752 = vmatprep.subr.bf16.mxu0 %v2982_v24  ;;  %2774 = vmatprep.subr.bf16.mxu1 %v2983_v25  ;;  %v3018_v25 = vld [vmem:[#allocation13 + $0x158] sm:$0xff]  }
 0x1ee   : > { %2753 = vmatpush3.bf16.msra.mxu0 %v2984_v26  ;;  %2775 = vmatpush3.bf16.msra.mxu1 %v2985_v27  ;;  %v3019_v26 = vld [vmem:[#allocation13 + $0x1d8] sm:$0xff]  }
 0x1ef   : > { %2754 = vmatprep.subr.bf16.mxu0 %v2986_v28  ;;  %2776 = vmatprep.subr.bf16.mxu1 %v2987_v29  ;;  %v3020_v27 = vld [vmem:[#allocation13 + $0x118] sm:$0xff]   ;;  %v3022_v29 = vld [vmem:[#allocation13 + $0x160] sm:$0xff]  }
 0x1f0   : > { %v3021_v28 = vld [vmem:[#allocation13 + $0x198] sm:$0xff]  }
 0x1f2   : > { %2755 = vmatpush3.bf16.msra.mxu0 %v2988_v30  ;;  %2777 = vmatpush3.bf16.msra.mxu1 %v2989_v31  ;;  %v3023_v30 = vld [vmem:[#allocation13 + $0x1e0] sm:$0xff]  }
 0x1f3   : > { %2756 = vmatprep.subr.bf16.mxu0 %v2990_v32  ;;  %2778 = vmatprep.subr.bf16.mxu1 %v2991_v13  ;;  %v3024_v31 = vld [vmem:[#allocation13 + $0x120] sm:$0xff]   ;;  %v3026_v13 = vld [vmem:[#allocation13 + $0x168] sm:$0xff]  }
 0x1f4   : > { %v3025_v32 = vld [vmem:[#allocation13 + $0x1a0] sm:$0xff]  }
 0x1f6   : > { %2757 = vmatpush3.bf16.msra.mxu0 %v2992_v33  ;;  %2779 = vmatpush3.bf16.msra.mxu1 %v2993_v34  ;;  %v3027_v33 = vld [vmem:[#allocation13 + $0x1e8] sm:$0xff]  }
 0x1f7   : > { %2758 = vmatprep.subr.bf16.mxu0 %v2994_v35  ;;  %2780 = vmatprep.subr.bf16.mxu1 %v2995_v36  ;;  %v3028_v34 = vld [vmem:[#allocation13 + $0x128] sm:$0xff]   ;;  %v3030_v36 = vld [vmem:[#allocation13 + $0x170] sm:$0xff]  }
 0x1f8   : > { %v3029_v35 = vld [vmem:[#allocation13 + $0x1a8] sm:$0xff]  }
 0x1fa   : > { %2759 = vmatpush3.bf16.msra.mxu0 %v2996_v37  ;;  %2781 = vmatpush3.bf16.msra.mxu1 %v2997_v38  ;;  %v3031_v37 = vld [vmem:[#allocation13 + $0x1f0] sm:$0xff]  }
 0x1fb   : > { %2760 = vmatprep.subr.bf16.mxu0 %v2998_v39  ;;  %2782 = vmatprep.subr.bf16.mxu1 %v2999_v40  ;;  %v3032_v38 = vld [vmem:[#allocation13 + $0x130] sm:$0xff]   ;;  %v3034_v40 = vld [vmem:[#allocation13 + $0x178] sm:$0xff]  }
 0x1fc   : > { %v3033_v39 = vld [vmem:[#allocation13 + $0x1b0] sm:$0xff]  }
 0x1fe   : > { %2761 = vmatpush3.bf16.msra.mxu0 %v3000_v41  ;;  %2783 = vmatpush3.bf16.msra.mxu1 %v3001_v42  ;;  %v3035_v41 = vld [vmem:[#allocation13 + $0x1f8] sm:$0xff]  }
 0x1ff   : > { %2762 = vmatprep.subr.bf16.mxu0 %v3002_v43  ;;  %2784 = vmatprep.subr.bf16.mxu1 %v3003_v44  ;;  %v3036_v42 = vld [vmem:[#allocation13 + $0x138] sm:$0xff]  }
 0x200   : > { %v3037_v43 = vld [vmem:[#allocation13 + $0x1b8] sm:$0xff]  }
 0x202   : > { %2763 = vmatpush3.bf16.msra.mxu0 %v3004_v60  ;;  %2785 = vmatpush3.bf16.msra.mxu1 %v3005_v45 }
 0x203   : > { %2792 = vmatprep.subr.bf16.mxu0 %v3006_v46  ;;  %2814 = vmatprep.subr.bf16.mxu1 %v3007_v47 }
 0x298   : > { %v1458_v48 = vpop.f32.mrb[0].mxu0  ;;  %v1499_v51 = vpop.f32.mrb[0].mxu1 }
 0x299   : > { %v1588_v49 = vsub.f32 %v3346_v0, %v1458_v48  ;;  %v1615_v50 = vpack.c.bf16 %v1458_v48, %v1458_v48  ;;  %v1460_v52 = vpop.f32.mrb[1].mxu0  ;;  %v1590_v54 = vsub.f32 %v3356_v2, %v1499_v51  ;;  %v1617_v55 = vpack.c.bf16 %v1499_v51, %v1499_v51  ;;  %v1501_v58 = vpop.f32.mrb[1].mxu1 }
 0x29a   : > { %v1589_v56 = vsub.f32 %v3351_v1, %v1460_v52  ;;  %v1616_v57 = vpack.c.bf16 %v1460_v52, %v1460_v52  ;;  %v1462_v59 = vpop.f32.mrb[2].mxu0  ;;  %v1618_v63 = vpack.c.bf16 %v1501_v58, %v1501_v58  ;;  %v1503_v8 = vpop.f32.mrb[2].mxu1  ;;  %v1591_v2 = vsub.f32 %v3361_v3, %v1501_v58  ;;  %v3012_v1 = vld [vmem:[#allocation13 + $0x108] sm:$0xff]   ;;  %v3017_v3 = vld [vmem:[#allocation13 + $0x190] sm:$0xff]  }
 0x29b   : > { %v1596_v62 = vand.u32 2147483647, %v1588_v49  ;;  %v1463_v9 = vpop.f32.mrb[3].mxu0  ;;  %v1504_v12 = vpop.f32.mrb[3].mxu1  ;;  %v1598_v16 = vand.u32 2147483647, %v1590_v54 }
 0x29c   : > { %v1597_v0 = vand.u32 2147483647, %v1589_v56  ;;  %2167 = vmatprep.mubr.bf16.mxu0 %v1616_v57  ;;  %2207 = vmatprep.mubr.bf16.mxu1 %v1618_v63  ;;  %v1599_v21 = vand.u32 2147483647, %v1591_v2 }
 0x29d   : > { %v1605_v15 = vadd.f32 %v1604_v53, %v1596_v62  ;;  %2168 = vmatmul.mubr.bf16.vlgmr.msra.gmra.mrb[8].mxu0 %v1615_v50  ;;  %2208 = vmatmul.mubr.bf16.vlgmr.msra.gmra.mrb[8].mxu1 %v1617_v55 }
 0x29e   : > { %2793 = vmatpush3.bf16.msra.mxu0 %v3008_v61  ;;  %2815 = vmatpush3.bf16.msra.mxu1 %v3009_v10 }
 0x29f   : > { %v1606_v17 = vadd.f32 %v1605_v15, %v1597_v0  ;;  %2794 = vmatprep.subr.bf16.mxu0 %v3010_v11  ;;  %2816 = vmatprep.subr.bf16.mxu1 %v3011_v14 }
 0x2a1   : > { %v1607_v22 = vadd.f32 %v1606_v17, %v1598_v16 }
 0x2a2   : > { %2795 = vmatpush3.bf16.msra.mxu0 %v3012_v1  ;;  %2817 = vmatpush3.bf16.msra.mxu1 %v3013_v18 }
 0x2a3   : > { %v3418_v24 = vadd.f32 %v1607_v22, %v1599_v21  ;;  %2796 = vmatprep.subr.bf16.mxu0 %v3014_v19  ;;  %2818 = vmatprep.subr.bf16.mxu1 %v3015_v20 }
 0x2a6   : > { %2797 = vmatpush3.bf16.msra.mxu0 %v3016_v23  ;;  %2819 = vmatpush3.bf16.msra.mxu1 %v3017_v3 }
 0x2a7   : > { %2798 = vmatprep.subr.bf16.mxu0 %v3018_v25  ;;  %2820 = vmatprep.subr.bf16.mxu1 %v3019_v26 }
 0x2aa   : > { %2799 = vmatpush3.bf16.msra.mxu0 %v3020_v27  ;;  %2821 = vmatpush3.bf16.msra.mxu1 %v3021_v28  ;;  %v1614_v27 = vld [vmem:[#allocation3] sm:$0xff] }
 0x2ab   : > { %2800 = vmatprep.subr.bf16.mxu0 %v3022_v29  ;;  %2822 = vmatprep.subr.bf16.mxu1 %v3023_v30 }
 0x2ae   : > { %2801 = vmatpush3.bf16.msra.mxu0 %v3024_v31  ;;  %2823 = vmatpush3.bf16.msra.mxu1 %v3025_v32 }
 0x2af   : > { %2802 = vmatprep.subr.bf16.mxu0 %v3026_v13  ;;  %2824 = vmatprep.subr.bf16.mxu1 %v3027_v33 }
 0x2b2   : > { %2803 = vmatpush3.bf16.msra.mxu0 %v3028_v34  ;;  %2825 = vmatpush3.bf16.msra.mxu1 %v3029_v35 }
 0x2b3   : > { %2804 = vmatprep.subr.bf16.mxu0 %v3030_v36  ;;  %2826 = vmatprep.subr.bf16.mxu1 %v3031_v37 }
 0x2b6   : > { %2805 = vmatpush3.bf16.msra.mxu0 %v3032_v38  ;;  %2827 = vmatpush3.bf16.msra.mxu1 %v3033_v39 }
 0x2b7   : > { %2806 = vmatprep.subr.bf16.mxu0 %v3034_v40  ;;  %2828 = vmatprep.subr.bf16.mxu1 %v3035_v41 }
 0x2b8   : > { %v1540_v44 = vpop.f32.mrb[4].mxu0  ;;  %v1581_v45 = vpop.f32.mrb[4].mxu1 }
 0x2b9   : > { %v1592_v60 = vsub.f32 %v3366_v4, %v1540_v44  ;;  %v1542_v46 = vpop.f32.mrb[5].mxu0  ;;  %v1621_v47 = vpack.c.bf16 %v1581_v45, %v1581_v45  ;;  %v1583_v50 = vpop.f32.mrb[5].mxu1  ;;  %v1619_v53 = vpack.c.bf16 %v1540_v44, %v1540_v44  ;;  %v1594_v54 = vsub.f32 %v3376_v6, %v1581_v45 }
 0x2ba   : > { %v1593_v48 = vsub.f32 %v3371_v5, %v1542_v46  ;;  %v1620_v49 = vpack.c.bf16 %v1542_v46, %v1542_v46  ;;  %v1544_v51 = vpop.f32.mrb[6].mxu0  ;;  %2807 = vmatpush3.bf16.msra.mxu0 %v3036_v42  ;;  %v1622_v55 = vpack.c.bf16 %v1583_v50, %v1583_v50  ;;  %v1585_v56 = vpop.f32.mrb[6].mxu1  ;;  %2829 = vmatpush3.bf16.msra.mxu1 %v3037_v43 }
 0x2bb   : > { %v1600_v52 = vand.u32 2147483647, %v1592_v60  ;;  %v1545_v57 = vpop.f32.mrb[7].mxu0  ;;  %v1586_v59 = vpop.f32.mrb[7].mxu1  ;;  %v1595_v61 = vsub.f32 %v3381_v7, %v1583_v50  ;;  %v1602_v5 = vand.u32 2147483647, %v1594_v54 }
 0x2bc   : > { %v1601_v58 = vand.u32 2147483647, %v1593_v48  ;;  %2247 = vmatprep.mubr.bf16.mxu0 %v1620_v49  ;;  %2287 = vmatprep.mubr.bf16.mxu1 %v1622_v55 }
 0x2bd   : > { %v1609_v4 = vadd.f32 %v3418_v24, %v1600_v52  ;;  %2248 = vmatmul.mubr.bf16.vlgmr.msra.gmra.mrb[12].mxu0 %v1619_v53  ;;  %2288 = vmatmul.mubr.bf16.vlgmr.msra.gmra.mrb[12].mxu1 %v1621_v47  ;;  %v1603_v63 = vand.u32 2147483647, %v1595_v61 }
 0x2bf   : > { %v1610_v62 = vadd.f32 %v1609_v4, %v1601_v58 }
 0x2c1   : > { %v1611_v8 = vadd.f32 %v1610_v62, %v1602_v5 }
 0x2c3   : > { %v1612_v9 = vadd.f32 %v1611_v8, %v1603_v63 }
 0x2c5   : > { %1613 = vst [vmem:[#allocation5] sm:$0xff] %v1612_v9 }
 0x370   : > { %v2764_v6 = vpop.f32.mrb[8].mxu0  ;;  %v2786_v10 = vpop.f32.mrb[8].mxu1 }
 0x371   : > { %v2765_v11 = vpop.f32.mrb[9].mxu0  ;;  %v2787_v12 = vpop.f32.mrb[9].mxu1 }
 0x372   : > { %v2766_v0 = vadd.f32 %v2765_v11, %v2764_v6  ;;  %v2767_v14 = vpop.f32.mrb[10].mxu0  ;;  %v2788_v15 = vadd.f32 %v2787_v12, %v2786_v10  ;;  %v2789_v16 = vpop.f32.mrb[10].mxu1 }
 0x373   : > { %v2768_v2 = vpop.f32.mrb[11].mxu0  ;;  %v2790_v1 = vpop.f32.mrb[11].mxu1 }
 0x374   : > { %v2210_v7 = vadd.f32 %v2788_v15, %v2766_v0 }
 0x390   : > { %v2808_v17 = vpop.f32.mrb[12].mxu0  ;;  %v2830_v18 = vpop.f32.mrb[12].mxu1 }
 0x391   : > { %v2809_v19 = vpop.f32.mrb[13].mxu0  ;;  %v2831_v21 = vpop.f32.mrb[13].mxu1 }
 0x392   : > { %v2810_v20 = vadd.f32 %v2809_v19, %v2808_v17  ;;  %v2811_v22 = vpop.f32.mrb[14].mxu0  ;;  %v2832_v23 = vadd.f32 %v2831_v21, %v2830_v18  ;;  %v2833_v24 = vpop.f32.mrb[14].mxu1 }
 0x393   : > { %v2812_v3 = vpop.f32.mrb[15].mxu0  ;;  %v2834_v26 = vpop.f32.mrb[15].mxu1 }
 0x394   : > { %v2250_v25 = vadd.f32 %v2810_v20, %v2210_v7 }
 0x396   : > { %v2290_v28 = vadd.f32 %v2832_v23, %v2250_v25 }
 0x398   : > { %v2295_v29 = vadd.f32 %v2290_v28, %v1614_v27 }
 0x39a   : > { %2296 = vst [vmem:[#allocation3] sm:$0xff] %v2295_v29 }
 0x39b PF: > { %2298 = sbr.rel (!%p1028_p8) target bundleno = 1147 (0x47b), region = 68  ;;  %v2303_v30 = vld [vmem:[#allocation5] sm:$0xff] (%p1028_p8)  ;;  %v2314_v31 = vld [vmem:[#allocation2] sm:$0xff] (%p1028_p8)  ;;  %s2652_s23 = sld [smem:[#allocation7 + $0x2]] (%p1028_p8) }
 0x39c   : > { %2304 = vadd.xlane.f32.xlu0 (%p1028_p8), %v2303_v30  ;;  %s2299_s10 = sld [smem:[#allocation7]] (%p1028_p8)  ;;  %s2653_s12 = sld [smem:[#allocation7 + $0x3]] (%p1028_p8) }
 0x39d   : > { %s2651_s29 = sld [smem:[#allocation7 + $0x1]] (%p1028_p8) }
 0x3a1   : > { %v2315_v32 = vld [vmem:[#allocation3] sm:$0xff] (%p1028_p8) }
 0x3a2   : > { %v2316_v13 = vsub.f32 %v2314_v31, %v2315_v32 }
 0x3a4   : > { %v2317_v33 = vmul.f32 %v2316_v13, %v2316_v13 }
 0x3a6   : > { %2318 = vadd.xlane.f32.xlu0 %v2317_v33 }
 0x429   : > { %v2305_v34 = vpop.xlane.xlu0 %2304 }
 0x42a   : > { %v2306_v35 = vrot.slane %v2305_v34, 4 }
 0x42c   : > { %v2307_v36 = vadd.f32 %v2306_v35, %v2305_v34 }
 0x42e   : > { %v2308_v38 = vrot.slane %v2307_v36, 2 }
 0x430   : > { %v2309_v41 = vadd.f32 %v2308_v38, %v2307_v36 }
 0x432   : > { %v2310_v43 = vrot.slane %v2309_v41, 1 }
 0x433   : > { %v2319_v37 = vpop.xlane.xlu0 %2318 }
 0x434   : > { %v2320_v39 = vrot.slane %v2319_v37, 4  ;;  %v2311_v60 = vadd.f32 %v2310_v43, %v2309_v41 }
 0x436   : > { %v2321_v40 = vadd.f32 %v2320_v39, %v2319_v37  ;;  %2836 = vpush %v2311_v60 }
 0x438   : > { %v2322_v42 = vrot.slane %v2321_v40, 2 }
 0x43a   : > { %v2323_v44 = vadd.f32 %v2322_v42, %v2321_v40 }
 0x43c   : > { %v2324_v45 = vrot.slane %v2323_v44, 1 }
 0x43e   : > { %v2325_v46 = vadd.f32 %v2324_v45, %v2323_v44 }
 0x440   : > { %2838 = vpush %v2325_v46 }
 0x467   : > { %s2837_s13 = spop %2836 }
 0x468   : > { %s2313_s11 = smul.f32 0.00048828125, %s2837_s13 }
 0x46a   : > { %s2328_s16 = smul.f32 %s2652_s23, %s2313_s11 }
 0x46c   : > { %s2329_s14 = sadd.f32 %s2328_s16, %s2299_s10 }
 0x471   : > { %s2839_s17 = spop %2838 }
 0x472   : > { %s2327_s30 = smul.f32 0.015625, %s2839_s17 }
 0x474   : > { %s2330_s20 = smul.f32 %s2653_s12, %s2327_s30 }
 0x476   : > { %s2331_s15 = sadd.f32 %s2330_s20, %s2329_s14 }
 0x478   : > { %s2332_s18 = sadd.f32 %s2651_s29, %s2331_s15 }
 0x47a   : > { %2334 = sst [smem:[#allocation14]] %s2332_s18 }
 0x47b PF: > { %p2873_p2 = scmp.eq.s32.totalorder %s3244_s27, 1  ;;  %s3134_s28 = scalar_lea.hbm %s3454_s5, 16 }
 0x47c   : > { %p3135_p3 = scmp.ne.s32.totalorder %s3454_s5, %s3134_s28  ;;  %p3140_p6 = scmp.lt.u32.totalorder %s3134_s28, %s3454_s5 }
 0x47e   : > { %p3136_p4 = pnand %p3135_p3, %p2873_p2 }
 0x480   : > { %p3137_p5 = pneg %p3136_p4 }
 0x482   : > { %p3142_p10 = pnand %p3140_p6, %p3137_p5 }
 0x484   : > { %3145 = shalt.err (!%p3142_p10)
}
 0x485   : > { %s3194_s26 = smov [#allocation14]  }
 0x486   : > { %2853 = dma.smem_to_hbm (%p2873_p2), %s3194_s26, 16, %s3454_s5, [#allocation10]  }
 0x487   : > { %3169 = dma.done.wait (%p2873_p2), [#allocation10], 16  }
 0x488   : > { %3171 = vsyncadd (%p2873_p2), [#allocation10], 4294967280 }
 0x489   : > { %2348 = sfence }
 0x48a PF: > { %s28_s24 = sadd.s32 1, %s3182_s24   ;;  %s3459_s23 = smov %s3178_s0 }
 0x48b   : > { %p25_p12 = scmp.ge.s32.totalorder %s28_s24, 4   ;;  %s3460_s0 = smov %s3462_s21 }
 0x48d   :  { %27 = sbr.rel (!%p25_p12) target bundleno = 21 (0x15), region = 119 }
 0x494   :  { %2354 = vsyncpa [#allocation9], 1 }
 0x495   :  { %2356 = vsyncpa [#allocation9 + $0x1], 1 }
 0x496   :  { %2357 = vsyncpa [#allocation12], 1 }
 0x497   :  { %2359 = vsyncpa [#allocation12 + $0x1], 1 }
 0x498   :  { %2360 = vsyncpa [#allocation10], 1 }
 0x499   :  { %2362 = vsyncpa [#allocation10 + $0x1], 1 }

</bundles_post_ra>
